<compile_context>
chip_gen: v7x
topology: tpu7x:2x2x1
jax: 0.10.0
libtpu: 0.0.40
codegen_flags: <defaults>
</compile_context>

<pallas_src>
import numpy as np
import jax
import jax.numpy as jnp
from jax.experimental import pallas as pl
from jax.experimental.pallas import tpu as pltpu


def _round_up(x, m):
    return ((x + m - 1) // m) * m


# MXU-friendly tile sizes: 256-aligned M/N (v6e/v7x 256x256 MXU), 512-deep K
# for bf16 sublane packing.  Per-step VMEM (double-buffered A + out + f32 acc
# + per-tile one-hot) is ~1.5 MiB, well inside even v7x's 32 MiB scoped VMEM.
_TM, _TN, _TK = 256, 256, 512


# ---------------------------------------------------------------------------
# Pallas kernel: tiled neighbor-color histogram.
#   out[i, c] = sum_j A[i, j] * (colors[j] == c)
# Grid = (M tiles, N tiles, K tiles), K innermost (reduction, "arbitrary").
# ---------------------------------------------------------------------------
def _wl_agg_kernel(a_ref, colors_ref, out_ref, acc_ref):
    j = pl.program_id(1)
    k = pl.program_id(2)

    @pl.when(k == 0)
    def _():
        acc_ref[...] = jnp.zeros_like(acc_ref)

    tk = colors_ref.shape[0]
    tn = out_ref.shape[1]
    colors = colors_ref[...]                                          # (tk, 1) i32
    # One-hot only for this (tk, tn) tile; column block j covers color ids
    # [j*tn, (j+1)*tn).  Padded nodes carry color -1 -> all-zero rows.
    lane = jax.lax.broadcasted_iota(jnp.int32, (tk, tn), 1) + j * tn
    onehot = (colors == lane).astype(a_ref.dtype)                     # (tk, tn)
    acc_ref[...] += jnp.dot(a_ref[...], onehot,
                            preferred_element_type=jnp.float32)

    @pl.when(k == pl.num_programs(2) - 1)
    def _():
        # Counts are exact integers; +0.5 before the cast for safe rounding.
        out_ref[...] = (acc_ref[...] + 0.5).astype(jnp.int32)


def wl_neighbor_histogram(a_dense, colors_col, c_pad, tm=_TM, tn=_TN, tk=_TK):
    """a_dense: (Np, Np) bf16/f32, colors_col: (Np, 1) i32 -> (Np, c_pad) i32."""
    n_pad = a_dense.shape[0]
    grid = (n_pad // tm, c_pad // tn, n_pad // tk)
    return pl.pallas_call(
        _wl_agg_kernel,
        out_shape=jax.ShapeDtypeStruct((n_pad, c_pad), jnp.int32),
        grid=grid,
        in_specs=[
            pl.BlockSpec((tm, tk), lambda i, j, k: (i, k)),   # A tile
            pl.BlockSpec((tk, 1), lambda i, j, k: (k, 0)),    # colors tile
        ],
        out_specs=pl.BlockSpec((tm, tn), lambda i, j, k: (i, j)),
        scratch_shapes=[pltpu.VMEM((tm, tn), jnp.float32)],
        compiler_params=pltpu.CompilerParams(
            dimension_semantics=("parallel", "parallel", "arbitrary")),
    )(a_dense, colors_col)


# ---------------------------------------------------------------------------
# WL module (forward only).  WLConv has no learnable parameters, only a
# persistent hashmap assigning compact ids to (color, sorted-neighbor) tuples.
# ---------------------------------------------------------------------------
class WLPallas:
    def __init__(self, num_it):
        self.num_it = num_it
        self.hashmap = {}  # (own_color, *sorted_neighbor_colors) -> label

    def _relabel(self, colors, counts, uniq):
        """counts[i, k] = #neighbors of i with (original) color uniq[k]."""
        n = colors.shape[0]
        new = np.empty(n, dtype=np.int64)
        for i in range(n):
            # uniq is sorted ascending, so the repeated list is already sorted.
            neigh = tuple(np.repeat(uniq, counts[i]).tolist())
            key = (int(colors[i]),) + neigh
            if key not in self.hashmap:
                self.hashmap[key] = len(self.hashmap)
            new[i] = self.hashmap[key]
        return new

    def __call__(self, x, edge_index):
        x = np.asarray(x)
        edge_index = np.asarray(edge_index)
        if x.ndim > 1:
            assert np.all(x.sum(axis=-1) == 1), "x must be one-hot"
            colors = x.argmax(axis=-1).astype(np.int64)
        else:
            colors = x.astype(np.int64)

        n = colors.shape[0]
        n_pad = _round_up(max(n, 1), max(_TM, _TK))
        # After per-iteration compaction there are at most n distinct colors,
        # so this fixed capacity is valid for every iteration and repeated
        # calls (no dependence on the raw color values / hashmap size).
        c_pad = _round_up(max(n, 1), _TN)

        # Dense adjacency (destination-row layout, see header comment).
        a = np.zeros((n_pad, n_pad), dtype=np.float32)
        if edge_index.size:
            np.add.at(a, (edge_index[1], edge_index[0]), 1.0)
        # bf16 is exact for edge multiplicities <= 256 (acc stays f32).
        a_dtype = jnp.bfloat16 if float(a.max()) <= 256.0 else jnp.float32
        a_dev = jnp.asarray(a, dtype=a_dtype)

        # One jitted kernel, fixed shapes -> compiled once, reused num_it times.
        hist_fn = jax.jit(lambda adj, col: wl_neighbor_histogram(adj, col, c_pad))

        for _ in range(self.num_it):
            uniq, compact = np.unique(colors, return_inverse=True)
            col = np.full((n_pad, 1), -1, dtype=np.int32)  # -1 -> zero one-hot row
            col[:n, 0] = compact.astype(np.int32)
            counts = np.asarray(jax.block_until_ready(
                hist_fn(a_dev, jnp.asarray(col))))[:n, :uniq.shape[0]]
            colors = self._relabel(colors, counts, uniq)
        return colors


# ---------------------------------------------------------------------------
# Pure-numpy reference of the same forward pass (for correctness checking).
# ---------------------------------------------------------------------------
def wl_reference(x, edge_index, num_it):
    x = np.asarray(x)
    edge_index = np.asarray(edge_index)
    if x.ndim > 1:
        colors = x.argmax(axis=-1).astype(np.int64)
    else:
        colors = x.astype(np.int64)
    n = colors.shape[0]
    hashmap = {}
    for _ in range(num_it):
        new = np.empty(n, dtype=np.int64)
        for i in range(n):
            neigh = sorted(int(c) for c in colors[edge_index[0][edge_index[1] == i]])
            key = (int(colors[i]),) + tuple(neigh)
            if key not in hashmap:
                hashmap[key] = len(hashmap)
            new[i] = hashmap[key]
        colors = new
    return colors


if __name__ == "__main__":
    key = jax.random.PRNGKey(0)
    k_lab, k_src, k_dst = jax.random.split(key, 3)

    N = 16            # nodes
    F = 4             # one-hot feature width (initial color classes)
    E = 48            # directed edges
    NUM_IT = 3

    labels = jax.random.randint(k_lab, (N,), 0, F, dtype=jnp.int32)
    x = jax.nn.one_hot(labels, F, dtype=jnp.float32)          # (N, F) one-hot
    src = jax.random.randint(k_src, (E,), 0, N, dtype=jnp.int32)
    dst = jax.random.randint(k_dst, (E,), 0, N, dtype=jnp.int32)
    edge_index = jnp.stack([src, dst], axis=0)                 # (2, E)

    model = WLPallas(num_it=NUM_IT)
    out = model(np.asarray(x), np.asarray(edge_index))

    ref = wl_reference(np.asarray(x), np.asarray(edge_index), NUM_IT)
    assert out.shape == (N,)
    assert np.array_equal(out, ref), f"mismatch:\n{out}\nvs\n{ref}"

    # Second call exercises the persistent hashmap path (previously buggy).
    out2 = model(np.asarray(x), np.asarray(edge_index))
    assert np.array_equal(out2, ref)

    print("KERNEL_OK")
</pallas_src>

<mosaic_0001>
module attributes {stable_mosaic.version = 11 : i64} {
  func.func @_wl_agg_kernel(%arg0: i32, %arg1: i32, %arg2: i32, %arg3: memref<256x512xbf16, #tpu.memory_space<vmem>>, %arg4: memref<512x1xi32, #tpu.memory_space<vmem>>, %arg5: memref<256x256xi32, #tpu.memory_space<vmem>>, %arg6: memref<256x256xf32, #tpu.memory_space<vmem>>) attributes {dimension_semantics = [#tpu.dimension_semantics<parallel>, #tpu.dimension_semantics<parallel>, #tpu.dimension_semantics<arbitrary>], iteration_bounds = array<i64: 2, 1, 1>, scalar_prefetch = 0 : i64, scratch_operands = 1 : i64, tpu.core_type = #tpu.core_type<tc>, window_params = [{transform_indices = @transform_0, window_bounds = array<i64: 256, 512>}, {transform_indices = @transform_1, window_bounds = array<i64: 512, 1>}, {transform_indices = @transform_2, window_bounds = array<i64: 256, 256>}]} {
    %c0_i32 = arith.constant 0 : i32
    %0 = arith.cmpi eq, %arg2, %c0_i32 : i32
    %1 = arith.extui %0 : i1 to i32
    %c0_i32_0 = arith.constant 0 : i32
    %2 = arith.cmpi ne, %1, %c0_i32_0 : i32
    scf.if %2 {
      %cst_10 = arith.constant 0.000000e+00 : f32
      %21 = vector.broadcast %cst_10 : f32 to vector<256x256xf32>
      %c0_11 = arith.constant 0 : index
      %c0_12 = arith.constant 0 : index
      %22 = vector.load %arg6[%c0_11, %c0_12] : memref<256x256xf32, #tpu.memory_space<vmem>>, vector<256x256xf32>
      tpu.vector_store %arg6[%c0_11, %c0_12], %21 {strides = array<i32>} : memref<256x256xf32, #tpu.memory_space<vmem>>, vector<256x256xf32>,
    } else {
    }
    %c0 = arith.constant 0 : index
    %c0_1 = arith.constant 0 : index
    %3 = vector.load %arg4[%c0, %c0_1] : memref<512x1xi32, #tpu.memory_space<vmem>>, vector<512x1xi32>
    %4 = tpu.iota {dimensions = array<i32: 1>} : vector<512x256xi32>
    %c256_i32 = arith.constant 256 : i32
    %5 = arith.muli %arg1, %c256_i32 : i32
    %6 = vector.broadcast %5 : i32 to vector<512x256xi32>
    %7 = arith.addi %4, %6 : vector<512x256xi32>
    %8 = vector.broadcast %3 : vector<512x1xi32> to vector<512x256xi32>
    %9 = arith.cmpi eq, %8, %7 : vector<512x256xi32>
    %10 = arith.extui %9 : vector<512x256xi1> to vector<512x256xi32>
    %11 = arith.sitofp %10 : vector<512x256xi32> to vector<512x256xf32>
    %12 = arith.truncf %11 : vector<512x256xf32> to vector<512x256xbf16>
    %c0_2 = arith.constant 0 : index
    %c0_3 = arith.constant 0 : index
    %13 = vector.load %arg6[%c0_2, %c0_3] : memref<256x256xf32, #tpu.memory_space<vmem>>, vector<256x256xf32>
    %c0_4 = arith.constant 0 : index
    %c0_5 = arith.constant 0 : index
    %14 = vector.load %arg3[%c0_4, %c0_5] : memref<256x512xbf16, #tpu.memory_space<vmem>>, vector<256x512xbf16>
    %cst = arith.constant dense<0.000000e+00> : vector<256x256xf32>
    %15 = tpu.matmul %14, %12, %cst {dimension_numbers = #tpu.dot_dimension_numbers<[1], [0], [0], [1], [0, 0, 1, 1], [], []>} : vector<256x512xbf16>, vector<512x256xbf16>, vector<256x256xf32> -> vector<256x256xf32>
    %16 = arith.addf %13, %15 : vector<256x256xf32>
    %c0_6 = arith.constant 0 : index
    %c0_7 = arith.constant 0 : index
    %17 = vector.load %arg6[%c0_6, %c0_7] : memref<256x256xf32, #tpu.memory_space<vmem>>, vector<256x256xf32>
    tpu.vector_store %arg6[%c0_6, %c0_7], %16 {strides = array<i32>} : memref<256x256xf32, #tpu.memory_space<vmem>>, vector<256x256xf32>,
    %c0_i32_8 = arith.constant 0 : i32
    %18 = arith.cmpi eq, %arg2, %c0_i32_8 : i32
    %19 = arith.extui %18 : i1 to i32
    %c0_i32_9 = arith.constant 0 : i32
    %20 = arith.cmpi ne, %19, %c0_i32_9 : i32
    scf.if %20 {
      %c0_10 = arith.constant 0 : index
      %c0_11 = arith.constant 0 : index
      %21 = vector.load %arg6[%c0_10, %c0_11] : memref<256x256xf32, #tpu.memory_space<vmem>>, vector<256x256xf32>
      %cst_12 = arith.constant 5.000000e-01 : f32
      %22 = vector.broadcast %cst_12 : f32 to vector<256x256xf32>
      %23 = arith.addf %21, %22 : vector<256x256xf32>
      %24 = arith.fptosi %23 : vector<256x256xf32> to vector<256x256xi32>
      %c0_13 = arith.constant 0 : index
      %c0_14 = arith.constant 0 : index
      %25 = vector.load %arg5[%c0_13, %c0_14] : memref<256x256xi32, #tpu.memory_space<vmem>>, vector<256x256xi32>
      tpu.vector_store %arg5[%c0_13, %c0_14], %24 {strides = array<i32>} : memref<256x256xi32, #tpu.memory_space<vmem>>, vector<256x256xi32>,
    } else {
    }
    return
  }
  func.func @transform_0(%arg0: i32, %arg1: i32, %arg2: i32) -> (i32, i32) {
    %c0_i32 = arith.constant 0 : i32
    return %arg0, %arg2 : i32, i32
  }
  func.func @transform_1(%arg0: i32, %arg1: i32, %arg2: i32) -> (i32, i32) {
    %c0_i32 = arith.constant 0 : i32
    %c0_i32_0 = arith.constant 0 : i32
    return %arg2, %c0_i32 : i32, i32
  }
  func.func @transform_2(%arg0: i32, %arg1: i32, %arg2: i32) -> (i32, i32) {
    %c0_i32 = arith.constant 0 : i32
    return %arg0, %arg1 : i32, i32
  }
}

</mosaic_0001>

<bundles_post_ra>
// kernel: _lambda_.1
= control target key start
LH: loop header
LB: loop body
LE: loop exit
PB: predicated region body
PF: predicated region fallthrough
CT: control target
= control target key end

     0   :  { %7 = vsyncpa [#allocation4], 0  ;;  %s3876_s0 = inlined_call_operand.hbm [shape: bf16[512,512], index: 0, kind: input, shape index: {}]   ;;  %s3877_s1 = inlined_call_operand.vmem [shape: s32[512,1], index: 1, kind: input, shape index: {}]   ;;  %s3878_s2 = inlined_call_operand.hbm [shape: s32[512,256], index: 2, kind: output, shape index: {}]  }
   0x1   :  { %9 = vsyncpa [#allocation4 + $0x1], 0 }
   0x2   :  { %10 = vsyncpa [#allocation5], 0 }
   0x3   :  { %12 = vsyncpa [#allocation5 + $0x1], 0  ;;  %s3173_s9 = smov 0   ;;  %s3175_s10 = smov 0  }
   0x4   :  { %s3177_s11 = smov 0   ;;  %s3179_s12 = smov 0  }
   0x5   :  { %s3181_s13 = smov 0   ;;  %s3183_s14 = smov 0  }
   0x6 LB: > { %s2336_s15 = sadd.s32 4294967295, %s3148_s14   ;;  %s2337_s16 = sadd.s32 4294967294, %s3148_s14   ;;  %s3148_s14 = sphi %s3183_s14, %s18_s14   ;;  %s3144_s13 = sphi %s3181_s13, %s3893_s13   ;;  %s3140_s12 = sphi %s3179_s12, %s3892_s12   ;;  %s3136_s11 = sphi %s3177_s11, %s3891_s11   ;;  %s3132_s10 = sphi %s3175_s10, %s3890_s10   ;;  %s3128_s9 = sphi %s3173_s9, %s3889_s9  }
   0x7   : > { %s37_s17 = sadd.s32 1, %s3144_s13  ;;  %s46_s18 = sadd.s32 1, %s3136_s11 }
   0x8   : > { %p39_p0 = scmp.ge.s32.totalorder %s37_s17, 2  ;;  %p53_p1 = scmp.ne.s32.totalorder %s3136_s11, %s3132_s10 }
   0x9   : > { %p54_p2 = scmp.eq.s32.totalorder %s3148_s14, 0  ;;  %p59_p3 = scmp.ne.s32.totalorder %s3132_s10, %s3128_s9 }
   0xa   : > { %s3895_s17 = smov (%p39_p0, %s37_s17), 0  ;;  %p60_p5 = scmp.eq.s32.totalorder %s2336_s15, 0 }
   0xb   : > { %p3214_p4 = por %p54_p2, %p53_p1  ;;  %s41_s20 = ssub.s32 %s3144_s13, %s3895_s17 }
   0xc   : > { %p111_p6 = scmp.eq.s32.totalorder %s2336_s15, 1  ;;  %p44_p7 = scmp.eq.s32.totalorder %s41_s20, 0 }
   0xd   : > { %p3220_p8 = por %p60_p5, %p59_p3  ;;  %p117_p10 = scmp.eq.s32.totalorder %s2337_s16, 1 }
   0xe   : > { %p3224_p9 = por %p111_p6, %p53_p1  ;;  %p2882_p13 = scmp.lt.s32.totalorder %s3148_s14, 2 }
   0xf   : > { %s3229_s23 = scalar_select %p44_p7, %s3136_s11, %s46_s18  }
  0x10   : > { %s3882_s22 = scalar_select %p3224_p9, 1, 0 }
  0x11   : > { %p3231_p11 = por %p117_p10, %p59_p3  ;;  %s146_s25 = sand.u32 1, %s3136_s11  }
  0x12   : > { %s2341_s26 = sshll.u32 %s146_s25, 9  ;;  %s2675_s27 = sshll.u32 %s3144_s13, 13 }
  0x13   : > { %s3883_s24 = scalar_select %p3231_p11, 1, 0 }
  0x14   : > { %s3242_s30 = scalar_lea.hbm %s3876_s0, %s2675_s27  ;;  %s150_s3 = scalar_lea.vmem [#allocation3], %s2341_s26 }
  0x15   : > { %s160_s4 = sshll.u32 %s150_s3, 4  ;;  %p3248_p0 = pnand %p2882_p13, %p3214_p4  ;;  %s3244_s4 = int_to_ptr.vmem [resolvable:$true] %s160_s4 }
  0x16   : > { %s3253_s6 = scalar_lea.sflag [#allocation4], %s146_s25  ;;  %s3036_s7 = scalar_lea.hbm %s3242_s30, 8192 }
  0x17   : > { %p3037_p2 = scmp.ne.s32.totalorder %s3242_s30, %s3036_s7  ;;  %p3038_p3 = pneg %p3248_p0 }
  0x18   : > { %s3041_s16 = scalar_lea.hbm %s3876_s0, 16384  ;;  %p3042_p4 = scmp.lt.u32.totalorder %s3242_s30, %s3876_s0 }
  0x19   : > { %p3039_p5 = pnand %p3038_p3, %p3037_p2  ;;  %p3043_p7 = scmp.lt.u32.totalorder %s3041_s16, %s3036_s7 }
  0x1a   : > { %p3045_p13 = scmp.lt.u32.totalorder %s3036_s7, %s3242_s30 }
  0x1b   : > { %p3040_p6 = pneg %p3039_p5  ;;  %p3044_p10 = por %p3043_p7, %p3042_p4 }
  0x1d   : > { %p3046_p12 = por %p3045_p13, %p3044_p10 }
  0x1f   : > { %p3047_p1 = pnand %p3046_p12, %p3040_p6 }
  0x21   : > { %3050 = shalt.err (!%p3047_p1)
}
  0x22   : > { %s3051_s20 = scalar_lea.vmem %s3244_s4, 8192  ;;  %s3150_s25 = smov [#allocation3]  }
  0x23   : > { %p3052_p2 = scmp.ne.s32.totalorder %s3244_s4, %s3051_s20  ;;  %s3056_s26 = sshll.u32 %s3150_s25, 4  ;;  %s3057_s26 = int_to_ptr.vmem [resolvable:$false] %s3056_s26 }
  0x24   : > { %s3058_s27 = scalar_lea.vmem %s3057_s26, 16384  ;;  %p3059_p9 = scmp.lt.s32.totalorder %s3244_s4, %s3057_s26 }
  0x25   : > { %p3054_p5 = pnand %p3052_p2, %p3038_p3  ;;  %p3060_p4 = scmp.lt.s32.totalorder %s3058_s27, %s3051_s20 }
  0x27   : > { %p3055_p11 = pneg %p3054_p5  ;;  %p3061_p7 = por %p3060_p4, %p3059_p9 }
  0x29   : > { %p3062_p10 = pnand %p3061_p7, %p3055_p11 }
  0x2b   : > { %3065 = shalt.err (!%p3062_p10)
}
  0x2c   : > { %s3151_s28 = smov 256   ;;  %s3152_s29 = smov 16  }
  0x2d   : > { %2877 = dma.hbm_to_vmem [thread:$0]  (!%p3248_p0), %s3242_s30, 8192, %s3244_s4, %s3253_s6, %s3151_s28, %s3151_s28, %s3152_s29  }
  0x2e   : > { %p168_p12 = scmp.lt.s32.totalorder %s3148_s14, 3  ;;  %p3885_p1 = scmp.ge.s32.totalorder %s3148_s14, 1 }
  0x30   : > { %p169_p3 = pnand %p3885_p1, %p168_p12 }
  0x31   : > { %s3285_s3 = sand.u32 (!%p169_p3), 1, %s3132_s10  }
  0x32   : > { %172 = sbr.rel (%p169_p3) target bundleno = 676 (0x2a4), region = 28  ;;  %s2346_s7 = sshll.u32 (!%p169_p3), %s3285_s3, 9 }
  0x33   : > { %s175_s8 = scalar_lea.sflag (!%p169_p3), [#allocation4], %s3285_s3  ;;  %s3291_s15 = scalar_lea.vmem (!%p169_p3), [#allocation3], %s2346_s7 }
  0x39   : > { %3119 = dma.done.wait (%p3220_p8), %s175_s8, 8192  }
  0x3a   : > { %3121 = vsyncadd (%p3220_p8), %s175_s8, 4294959104  ;;  %v3153_v0 = vmov 0   ;;  %v314_v1 = vld [vmem:[%s3877_s1 + $0x100] sm:$0xff]  ;;  %v315_v3 = vld [vmem:[%s3877_s1 + $0x108] sm:$0xff]  ;;  %v346_v63 = vlaneseq  ;;  %p3886_p9 = scmp.ne.s32.totalorder %s3882_s22, 0  ;;  %s3155_s29 = smov [#allocation6]  }
  0x3b   : > { %2939 = vset.pattern.permute.xlu1 %v3153_v0  ;;  %2938 = vset.pattern.permute.xlu0 %v3153_v0  ;;  %v282_v2 = vld [vmem:[%s3877_s1] sm:$0xff]  ;;  %v283_v4 = vld [vmem:[%s3877_s1 + $0x8] sm:$0xff]  ;;  %v285_v5 = vld [vmem:[%s3877_s1 + $0x18] sm:$0xff]  ;;  %s3070_s8 = sshll.u32 %s3155_s29, 4  ;;  %s3071_s8 = int_to_ptr.vmem [resolvable:$false] %s3070_s8 }
  0x3c   : > { %450 = vperm.xlu1 %2939, %v314_v1   ;;  %354 = vperm.xlu0 %2938, %v282_v2   ;;  %v284_v6 = vld [vmem:[%s3877_s1 + $0x10] sm:$0xff]  ;;  %v317_v7 = vld [vmem:[%s3877_s1 + $0x118] sm:$0xff]  ;;  %v287_v9 = vld [vmem:[%s3877_s1 + $0x28] sm:$0xff]  ;;  %v3489_v2 = vand.u32 127, %v346_v63  ;;  %s3072_s30 = scalar_lea.vmem %s3071_s8, 16384 }
  0x3d   : > { %v316_v8 = vld [vmem:[%s3877_s1 + $0x110] sm:$0xff]  ;;  %v286_v10 = vld [vmem:[%s3877_s1 + $0x20] sm:$0xff]  ;;  %v319_v11 = vld [vmem:[%s3877_s1 + $0x128] sm:$0xff] }
  0x3e   : > { %v318_v12 = vld [vmem:[%s3877_s1 + $0x120] sm:$0xff]  ;;  %v289_v13 = vld [vmem:[%s3877_s1 + $0x38] sm:$0xff]  ;;  %v288_v14 = vld [vmem:[%s3877_s1 + $0x30] sm:$0xff] }
  0x3f   : > { %v321_v15 = vld [vmem:[%s3877_s1 + $0x138] sm:$0xff]  ;;  %v320_v16 = vld [vmem:[%s3877_s1 + $0x130] sm:$0xff]  ;;  %v291_v17 = vld [vmem:[%s3877_s1 + $0x48] sm:$0xff] }
  0x40   : > { %453 = vperm.xlu1 %2939, %v315_v3   ;;  %357 = vperm.xlu0 %2938, %v283_v4   ;;  %v290_v18 = vld [vmem:[%s3877_s1 + $0x40] sm:$0xff]  ;;  %v323_v19 = vld [vmem:[%s3877_s1 + $0x148] sm:$0xff]  ;;  %v293_v21 = vld [vmem:[%s3877_s1 + $0x58] sm:$0xff] }
  0x41   : > { %v322_v20 = vld [vmem:[%s3877_s1 + $0x140] sm:$0xff]  ;;  %v292_v22 = vld [vmem:[%s3877_s1 + $0x50] sm:$0xff]  ;;  %v325_v23 = vld [vmem:[%s3877_s1 + $0x158] sm:$0xff] }
  0x42   : > { %v324_v24 = vld [vmem:[%s3877_s1 + $0x150] sm:$0xff]  ;;  %v295_v25 = vld [vmem:[%s3877_s1 + $0x68] sm:$0xff]  ;;  %v294_v26 = vld [vmem:[%s3877_s1 + $0x60] sm:$0xff] }
  0x43   : > { %v327_v27 = vld [vmem:[%s3877_s1 + $0x168] sm:$0xff]  ;;  %v326_v28 = vld [vmem:[%s3877_s1 + $0x160] sm:$0xff]  ;;  %v297_v29 = vld [vmem:[%s3877_s1 + $0x78] sm:$0xff] }
  0x44   : > { %363 = vperm.xlu1 %2939, %v285_v5   ;;  %360 = vperm.xlu0 %2938, %v284_v6   ;;  %v296_v30 = vld [vmem:[%s3877_s1 + $0x70] sm:$0xff]  ;;  %v329_v31 = vld [vmem:[%s3877_s1 + $0x178] sm:$0xff]  ;;  %v299_v33 = vld [vmem:[%s3877_s1 + $0x88] sm:$0xff] }
  0x45   : > { %v328_v32 = vld [vmem:[%s3877_s1 + $0x170] sm:$0xff]  ;;  %v298_v34 = vld [vmem:[%s3877_s1 + $0x80] sm:$0xff]  ;;  %v331_v35 = vld [vmem:[%s3877_s1 + $0x188] sm:$0xff] }
  0x46   : > { %v330_v36 = vld [vmem:[%s3877_s1 + $0x180] sm:$0xff]  ;;  %v301_v37 = vld [vmem:[%s3877_s1 + $0x98] sm:$0xff]  ;;  %v300_v38 = vld [vmem:[%s3877_s1 + $0x90] sm:$0xff] }
  0x47   : > { %v333_v39 = vld [vmem:[%s3877_s1 + $0x198] sm:$0xff]  ;;  %v332_v40 = vld [vmem:[%s3877_s1 + $0x190] sm:$0xff]  ;;  %v303_v41 = vld [vmem:[%s3877_s1 + $0xa8] sm:$0xff] }
  0x48   : > { %459 = vperm.xlu1 %2939, %v317_v7   ;;  %456 = vperm.xlu0 %2938, %v316_v8   ;;  %v302_v42 = vld [vmem:[%s3877_s1 + $0xa0] sm:$0xff]  ;;  %v335_v43 = vld [vmem:[%s3877_s1 + $0x1a8] sm:$0xff]  ;;  %v305_v45 = vld [vmem:[%s3877_s1 + $0xb8] sm:$0xff]  ;;  %v3494_v7 = vadd.s32 128, %v3489_v2 }
  0x49   : > { %v334_v44 = vld [vmem:[%s3877_s1 + $0x1a0] sm:$0xff]  ;;  %v304_v46 = vld [vmem:[%s3877_s1 + $0xb0] sm:$0xff]  ;;  %v337_v47 = vld [vmem:[%s3877_s1 + $0x1b8] sm:$0xff] }
  0x4a   : > { %v336_v48 = vld [vmem:[%s3877_s1 + $0x1b0] sm:$0xff]  ;;  %v307_v49 = vld [vmem:[%s3877_s1 + $0xc8] sm:$0xff]  ;;  %v306_v50 = vld [vmem:[%s3877_s1 + $0xc0] sm:$0xff] }
  0x4b   : > { %v339_v51 = vld [vmem:[%s3877_s1 + $0x1c8] sm:$0xff]  ;;  %v338_v52 = vld [vmem:[%s3877_s1 + $0x1c0] sm:$0xff]  ;;  %v309_v53 = vld [vmem:[%s3877_s1 + $0xd8] sm:$0xff] }
  0x4c   : > { %369 = vperm.xlu1 %2939, %v287_v9   ;;  %366 = vperm.xlu0 %2938, %v286_v10   ;;  %v308_v54 = vld [vmem:[%s3877_s1 + $0xd0] sm:$0xff]  ;;  %v341_v55 = vld [vmem:[%s3877_s1 + $0x1d8] sm:$0xff]  ;;  %v311_v57 = vld [vmem:[%s3877_s1 + $0xe8] sm:$0xff]  ;;  %v3154_v10 = vmov 1.0|1.0  }
  0x4d   : > { %v340_v56 = vld [vmem:[%s3877_s1 + $0x1d0] sm:$0xff]  ;;  %v310_v58 = vld [vmem:[%s3877_s1 + $0xe0] sm:$0xff]  ;;  %v343_v59 = vld [vmem:[%s3877_s1 + $0x1e8] sm:$0xff] }
  0x4e   : > { %v342_v60 = vld [vmem:[%s3877_s1 + $0x1e0] sm:$0xff]  ;;  %v313_v61 = vld [vmem:[%s3877_s1 + $0xf8] sm:$0xff]  ;;  %v312_v62 = vld [vmem:[%s3877_s1 + $0xf0] sm:$0xff] }
  0x4f   : > { %v345_v0 = vld [vmem:[%s3877_s1 + $0x1f8] sm:$0xff]  ;;  %v344_v1 = vld [vmem:[%s3877_s1 + $0x1f0] sm:$0xff] }
  0x50   : > { %465 = vperm.xlu1 %2939, %v319_v11   ;;  %462 = vperm.xlu0 %2938, %v318_v12   ;;  %v2942_v3 = vld [vmem:[%s3291_s15 + $0x4] ss:$16 sps:$4 sm:$0xff]   ;;  %v2945_v6 = vld [vmem:[%s3291_s15 + $0xc] ss:$16 sps:$4 sm:$0xff]  }
  0x51   : > { %1473 = vmatprep.mubr.bf16.mxu1 %v2942_v3  ;;  %1666 = vmatprep.mubr.bf16.mxu0 %v2945_v6  ;;  %v2940_v6 = vld [vmem:[%s3291_s15] ss:$16 sps:$4 sm:$0xff]  }
  0x54   : > { %375 = vperm.xlu1 %2939, %v289_v13   ;;  %372 = vperm.xlu0 %2938, %v288_v14  }
  0x58   : > { %471 = vperm.xlu1 %2939, %v321_v15   ;;  %468 = vperm.xlu0 %2938, %v320_v16  }
  0x5c   : > { %381 = vperm.xlu1 %2939, %v291_v17   ;;  %378 = vperm.xlu0 %2938, %v290_v18  }
  0x60   : > { %477 = vperm.xlu1 %2939, %v323_v19   ;;  %474 = vperm.xlu0 %2938, %v322_v20  }
  0x64   : > { %387 = vperm.xlu1 %2939, %v293_v21   ;;  %384 = vperm.xlu0 %2938, %v292_v22  }
  0x68   : > { %483 = vperm.xlu1 %2939, %v325_v23   ;;  %480 = vperm.xlu0 %2938, %v324_v24  }
  0x6c   : > { %393 = vperm.xlu1 %2939, %v295_v25   ;;  %390 = vperm.xlu0 %2938, %v294_v26  }
  0x70   : > { %489 = vperm.xlu1 %2939, %v327_v27   ;;  %486 = vperm.xlu0 %2938, %v326_v28  }
  0x74   : > { %399 = vperm.xlu1 %2939, %v297_v29   ;;  %396 = vperm.xlu0 %2938, %v296_v30  }
  0x78   : > { %495 = vperm.xlu1 %2939, %v329_v31   ;;  %492 = vperm.xlu0 %2938, %v328_v32  }
  0x7c   : > { %405 = vperm.xlu1 %2939, %v299_v33   ;;  %402 = vperm.xlu0 %2938, %v298_v34  }
  0x80   : > { %501 = vperm.xlu1 %2939, %v331_v35   ;;  %498 = vperm.xlu0 %2938, %v330_v36  }
  0x84   : > { %411 = vperm.xlu1 %2939, %v301_v37   ;;  %408 = vperm.xlu0 %2938, %v300_v38  }
  0x88   : > { %507 = vperm.xlu1 %2939, %v333_v39   ;;  %504 = vperm.xlu0 %2938, %v332_v40  }
  0x8c   : > { %417 = vperm.xlu1 %2939, %v303_v41   ;;  %414 = vperm.xlu0 %2938, %v302_v42  }
  0x90   : > { %513 = vperm.xlu1 %2939, %v335_v43   ;;  %510 = vperm.xlu0 %2938, %v334_v44  }
  0x94   : > { %423 = vperm.xlu1 %2939, %v305_v45   ;;  %420 = vperm.xlu0 %2938, %v304_v46  }
  0x98   : > { %519 = vperm.xlu1 %2939, %v337_v47   ;;  %516 = vperm.xlu0 %2938, %v336_v48  }
  0x9c   : > { %429 = vperm.xlu1 %2939, %v307_v49   ;;  %426 = vperm.xlu0 %2938, %v306_v50  }
  0xa0   : > { %525 = vperm.xlu1 %2939, %v339_v51   ;;  %522 = vperm.xlu0 %2938, %v338_v52  }
  0xa4   : > { %435 = vperm.xlu1 %2939, %v309_v53   ;;  %432 = vperm.xlu0 %2938, %v308_v54  }
  0xa8   : > { %531 = vperm.xlu1 %2939, %v341_v55   ;;  %528 = vperm.xlu0 %2938, %v340_v56  }
  0xac   : > { %441 = vperm.xlu1 %2939, %v311_v57   ;;  %438 = vperm.xlu0 %2938, %v310_v58  }
  0xb0   : > { %537 = vperm.xlu1 %2939, %v343_v59   ;;  %534 = vperm.xlu0 %2938, %v342_v60  }
  0xb4   : > { %447 = vperm.xlu1 %2939, %v313_v61   ;;  %444 = vperm.xlu0 %2938, %v312_v62  }
  0xb8   : > { %543 = vperm.xlu1 %2939, %v345_v0   ;;  %540 = vperm.xlu0 %2938, %v344_v1  }
  0xbb   : > { %v451_v4 = vpop.permute.xlu1 %450  ;;  %v355_v5 = vpop.permute.xlu0 %354 }
  0xbc   : > { %vm546_vm1 = vcmp.eq.s32.totalorder %v355_v5, %v3494_v7  ;;  %vm610_vm6 = vcmp.eq.s32.totalorder %v451_v4, %v3494_v7  ;;  %vm609_vm7 = vcmp.eq.s32.totalorder %v451_v4, %v3489_v2  ;;  %vm545_vm9 = vcmp.eq.s32.totalorder %v355_v5, %v3489_v2 }
  0xbf   : > { %v454_v8 = vpop.permute.xlu1 %453  ;;  %v358_v9 = vpop.permute.xlu0 %357 }
  0xc0   : > { %vm611_vm0 = vcmp.eq.s32.totalorder %v454_v8, %v3489_v2  ;;  %vm548_vm2 = vcmp.eq.s32.totalorder %v358_v9, %v3494_v7  ;;  %vm612_vm3 = vcmp.eq.s32.totalorder %v454_v8, %v3494_v7  ;;  %vm547_vm4 = vcmp.eq.s32.totalorder %v358_v9, %v3489_v2 }
  0xc1   : > { %vm2540_vm5 = vmpackc.low %vm548_vm2, %vm546_vm1 }
  0xc2   : > { %2541 = vmatprep.subr.msk.bf16.mxu1 %vm2540_vm5, %v3154_v10  ;;  %vm2604_vm8 = vmpackc.low %vm612_vm3, %vm610_vm6 }
  0xc3   : > { %2605 = vmatprep.subr.msk.bf16.mxu0 %vm2604_vm8, %v3154_v10  ;;  %vm2606_vm10 = vmpackc.low %vm611_vm0, %vm609_vm7  ;;  %v364_v11 = vpop.permute.xlu1 %363  ;;  %v361_v12 = vpop.permute.xlu0 %360 }
  0xc4   : > { %2607 = vmatpush1.bf16.msk.msra.mxu0 %vm2606_vm10, %v3154_v10  ;;  %vm551_vm11 = vcmp.eq.s32.totalorder %v364_v11, %v3489_v2  ;;  %vm552_vm12 = vcmp.eq.s32.totalorder %v364_v11, %v3494_v7  ;;  %vm2542_vm13 = vmpackc.low %vm547_vm4, %vm545_vm9  ;;  %vm549_vm14 = vcmp.eq.s32.totalorder %v361_v12, %v3489_v2  ;;  %vm550_vm15 = vcmp.eq.s32.totalorder %v361_v12, %v3494_v7  ;;  %v2946_v11 = vld [vmem:[%s3291_s15 + $0x24] ss:$16 sps:$4 sm:$0xff]   ;;  %v2943_v12 = vld [vmem:[%s3291_s15 + $0x8] ss:$16 sps:$4 sm:$0xff]  }
  0xc5   : > { %2543 = vmatpush1.bf16.msk.msra.mxu1 %vm2542_vm13, %v3154_v10  ;;  %vm2544_vm1 = vmpackc.low %vm552_vm12, %vm550_vm15 }
  0xc6   : > { %vm2546_vm2 = vmpackc.low %vm551_vm11, %vm549_vm14  ;;  %2545 = vmatprep.subr.msk.bf16.mxu1 %vm2544_vm1, %v3154_v10 }
  0xc7   : > { %v460_v13 = vpop.permute.xlu1 %459  ;;  %v457_v14 = vpop.permute.xlu0 %456 }
  0xc8   : > { %vm615_vm0 = vcmp.eq.s32.totalorder %v460_v13, %v3489_v2  ;;  %vm616_vm3 = vcmp.eq.s32.totalorder %v460_v13, %v3494_v7  ;;  %vm613_vm5 = vcmp.eq.s32.totalorder %v457_v14, %v3489_v2  ;;  %vm614_vm4 = vcmp.eq.s32.totalorder %v457_v14, %v3494_v7  ;;  %v2949_v13 = vld [vmem:[%s3291_s15 + $0x2c] ss:$16 sps:$4 sm:$0xff]   ;;  %v2948_v14 = vld [vmem:[%s3291_s15 + $0x20] ss:$16 sps:$4 sm:$0xff]  }
  0xc9   : > { %2547 = vmatpush1.bf16.msk.msra.mxu1 %vm2546_vm2, %v3154_v10  ;;  %vm2608_vm6 = vmpackc.low %vm616_vm3, %vm614_vm4 }
  0xca   : > { %vm2610_vm7 = vmpackc.low %vm615_vm0, %vm613_vm5  ;;  %2609 = vmatprep.subr.msk.bf16.mxu0 %vm2608_vm6, %v3154_v10 }
  0xcb   : > { %v370_v15 = vpop.permute.xlu1 %369  ;;  %2611 = vmatpush1.bf16.msk.msra.mxu0 %vm2610_vm7, %v3154_v10  ;;  %v367_v16 = vpop.permute.xlu0 %366 }
  0xcc   : > { %vm555_vm8 = vcmp.eq.s32.totalorder %v370_v15, %v3489_v2  ;;  %vm556_vm9 = vcmp.eq.s32.totalorder %v370_v15, %v3494_v7  ;;  %vm553_vm10 = vcmp.eq.s32.totalorder %v367_v16, %v3489_v2  ;;  %vm554_vm11 = vcmp.eq.s32.totalorder %v367_v16, %v3494_v7  ;;  %v2955_v15 = vld [vmem:[%s3291_s15 + $0x4c] ss:$16 sps:$4 sm:$0xff]   ;;  %v2954_v16 = vld [vmem:[%s3291_s15 + $0x40] ss:$16 sps:$4 sm:$0xff]  }
  0xcd   : > { %vm2548_vm12 = vmpackc.low %vm556_vm9, %vm554_vm11 }
  0xce   : > { %vm2550_vm13 = vmpackc.low %vm555_vm8, %vm553_vm10  ;;  %2549 = vmatprep.subr.msk.bf16.mxu1 %vm2548_vm12, %v3154_v10 }
  0xcf   : > { %v466_v17 = vpop.permute.xlu1 %465  ;;  %2551 = vmatpush1.bf16.msk.msra.mxu1 %vm2550_vm13, %v3154_v10  ;;  %v463_v18 = vpop.permute.xlu0 %462 }
  0xd0   : > { %vm619_vm14 = vcmp.eq.s32.totalorder %v466_v17, %v3489_v2  ;;  %vm620_vm15 = vcmp.eq.s32.totalorder %v466_v17, %v3494_v7  ;;  %vm617_vm1 = vcmp.eq.s32.totalorder %v463_v18, %v3489_v2  ;;  %vm618_vm2 = vcmp.eq.s32.totalorder %v463_v18, %v3494_v7  ;;  %v2957_v17 = vld [vmem:[%s3291_s15 + $0x48] ss:$16 sps:$4 sm:$0xff]   ;;  %v2961_v18 = vld [vmem:[%s3291_s15 + $0x6c] ss:$16 sps:$4 sm:$0xff]  }
  0xd1   : > { %vm2612_vm0 = vmpackc.low %vm620_vm15, %vm618_vm2 }
  0xd2   : > { %vm2614_vm3 = vmpackc.low %vm619_vm14, %vm617_vm1  ;;  %2613 = vmatprep.subr.msk.bf16.mxu0 %vm2612_vm0, %v3154_v10 }
  0xd3   : > { %v376_v19 = vpop.permute.xlu1 %375  ;;  %2615 = vmatpush1.bf16.msk.msra.mxu0 %vm2614_vm3, %v3154_v10  ;;  %v373_v20 = vpop.permute.xlu0 %372 }
  0xd4   : > { %vm559_vm5 = vcmp.eq.s32.totalorder %v376_v19, %v3489_v2  ;;  %vm560_vm4 = vcmp.eq.s32.totalorder %v376_v19, %v3494_v7  ;;  %vm557_vm6 = vcmp.eq.s32.totalorder %v373_v20, %v3489_v2  ;;  %vm558_vm7 = vcmp.eq.s32.totalorder %v373_v20, %v3494_v7  ;;  %v2960_v19 = vld [vmem:[%s3291_s15 + $0x60] ss:$16 sps:$4 sm:$0xff]   ;;  %v2964_v20 = vld [vmem:[%s3291_s15 + $0x84] ss:$16 sps:$4 sm:$0xff]  }
  0xd5   : > { %vm2552_vm8 = vmpackc.low %vm560_vm4, %vm558_vm7 }
  0xd6   : > { %vm2554_vm9 = vmpackc.low %vm559_vm5, %vm557_vm6  ;;  %2553 = vmatprep.subr.msk.bf16.mxu1 %vm2552_vm8, %v3154_v10 }
  0xd7   : > { %v472_v21 = vpop.permute.xlu1 %471  ;;  %2555 = vmatpush1.bf16.msk.msra.mxu1 %vm2554_vm9, %v3154_v10  ;;  %v469_v22 = vpop.permute.xlu0 %468 }
  0xd8   : > { %vm623_vm10 = vcmp.eq.s32.totalorder %v472_v21, %v3489_v2  ;;  %vm624_vm11 = vcmp.eq.s32.totalorder %v472_v21, %v3494_v7  ;;  %vm621_vm12 = vcmp.eq.s32.totalorder %v469_v22, %v3489_v2  ;;  %vm622_vm13 = vcmp.eq.s32.totalorder %v469_v22, %v3494_v7  ;;  %v2963_v21 = vld [vmem:[%s3291_s15 + $0x68] ss:$16 sps:$4 sm:$0xff]   ;;  %v2967_v22 = vld [vmem:[%s3291_s15 + $0x8c] ss:$16 sps:$4 sm:$0xff]  }
  0xd9   : > { %vm2616_vm14 = vmpackc.low %vm624_vm11, %vm622_vm13 }
  0xda   : > { %vm2618_vm15 = vmpackc.low %vm623_vm10, %vm621_vm12  ;;  %2617 = vmatprep.subr.msk.bf16.mxu0 %vm2616_vm14, %v3154_v10 }
  0xdb   : > { %v382_v23 = vpop.permute.xlu1 %381  ;;  %2619 = vmatpush1.bf16.msk.msra.mxu0 %vm2618_vm15, %v3154_v10  ;;  %v379_v24 = vpop.permute.xlu0 %378 }
  0xdc   : > { %vm563_vm1 = vcmp.eq.s32.totalorder %v382_v23, %v3489_v2  ;;  %vm564_vm2 = vcmp.eq.s32.totalorder %v382_v23, %v3494_v7  ;;  %vm561_vm0 = vcmp.eq.s32.totalorder %v379_v24, %v3489_v2  ;;  %vm562_vm3 = vcmp.eq.s32.totalorder %v379_v24, %v3494_v7  ;;  %v2966_v23 = vld [vmem:[%s3291_s15 + $0x80] ss:$16 sps:$4 sm:$0xff]   ;;  %v2970_v24 = vld [vmem:[%s3291_s15 + $0xa4] ss:$16 sps:$4 sm:$0xff]  }
  0xdd   : > { %vm2556_vm5 = vmpackc.low %vm564_vm2, %vm562_vm3 }
  0xde   : > { %vm2558_vm4 = vmpackc.low %vm563_vm1, %vm561_vm0  ;;  %2557 = vmatprep.subr.msk.bf16.mxu1 %vm2556_vm5, %v3154_v10 }
  0xdf   : > { %v478_v25 = vpop.permute.xlu1 %477  ;;  %2559 = vmatpush1.bf16.msk.msra.mxu1 %vm2558_vm4, %v3154_v10  ;;  %v475_v26 = vpop.permute.xlu0 %474 }
  0xe0   : > { %vm627_vm6 = vcmp.eq.s32.totalorder %v478_v25, %v3489_v2  ;;  %vm628_vm7 = vcmp.eq.s32.totalorder %v478_v25, %v3494_v7  ;;  %vm625_vm8 = vcmp.eq.s32.totalorder %v475_v26, %v3489_v2  ;;  %vm626_vm9 = vcmp.eq.s32.totalorder %v475_v26, %v3494_v7  ;;  %v2969_v25 = vld [vmem:[%s3291_s15 + $0x88] ss:$16 sps:$4 sm:$0xff]   ;;  %v2973_v26 = vld [vmem:[%s3291_s15 + $0xac] ss:$16 sps:$4 sm:$0xff]  }
  0xe1   : > { %vm2620_vm10 = vmpackc.low %vm628_vm7, %vm626_vm9 }
  0xe2   : > { %vm2622_vm11 = vmpackc.low %vm627_vm6, %vm625_vm8  ;;  %2621 = vmatprep.subr.msk.bf16.mxu0 %vm2620_vm10, %v3154_v10 }
  0xe3   : > { %v388_v27 = vpop.permute.xlu1 %387  ;;  %2623 = vmatpush1.bf16.msk.msra.mxu0 %vm2622_vm11, %v3154_v10  ;;  %v385_v28 = vpop.permute.xlu0 %384 }
  0xe4   : > { %vm567_vm12 = vcmp.eq.s32.totalorder %v388_v27, %v3489_v2  ;;  %vm568_vm13 = vcmp.eq.s32.totalorder %v388_v27, %v3494_v7  ;;  %vm565_vm14 = vcmp.eq.s32.totalorder %v385_v28, %v3489_v2  ;;  %vm566_vm15 = vcmp.eq.s32.totalorder %v385_v28, %v3494_v7  ;;  %v2972_v27 = vld [vmem:[%s3291_s15 + $0xa0] ss:$16 sps:$4 sm:$0xff]   ;;  %v2976_v28 = vld [vmem:[%s3291_s15 + $0xc4] ss:$16 sps:$4 sm:$0xff]  }
  0xe5   : > { %vm2560_vm1 = vmpackc.low %vm568_vm13, %vm566_vm15 }
  0xe6   : > { %vm2562_vm2 = vmpackc.low %vm567_vm12, %vm565_vm14  ;;  %2561 = vmatprep.subr.msk.bf16.mxu1 %vm2560_vm1, %v3154_v10 }
  0xe7   : > { %v484_v29 = vpop.permute.xlu1 %483  ;;  %2563 = vmatpush1.bf16.msk.msra.mxu1 %vm2562_vm2, %v3154_v10  ;;  %v481_v30 = vpop.permute.xlu0 %480 }
  0xe8   : > { %vm631_vm0 = vcmp.eq.s32.totalorder %v484_v29, %v3489_v2  ;;  %vm632_vm3 = vcmp.eq.s32.totalorder %v484_v29, %v3494_v7  ;;  %vm629_vm5 = vcmp.eq.s32.totalorder %v481_v30, %v3489_v2  ;;  %vm630_vm4 = vcmp.eq.s32.totalorder %v481_v30, %v3494_v7  ;;  %v2975_v29 = vld [vmem:[%s3291_s15 + $0xa8] ss:$16 sps:$4 sm:$0xff]   ;;  %v2979_v30 = vld [vmem:[%s3291_s15 + $0xcc] ss:$16 sps:$4 sm:$0xff]  }
  0xe9   : > { %vm2624_vm6 = vmpackc.low %vm632_vm3, %vm630_vm4 }
  0xea   : > { %vm2626_vm7 = vmpackc.low %vm631_vm0, %vm629_vm5  ;;  %2625 = vmatprep.subr.msk.bf16.mxu0 %vm2624_vm6, %v3154_v10 }
  0xeb   : > { %v394_v31 = vpop.permute.xlu1 %393  ;;  %2627 = vmatpush1.bf16.msk.msra.mxu0 %vm2626_vm7, %v3154_v10  ;;  %v391_v32 = vpop.permute.xlu0 %390 }
  0xec   : > { %vm571_vm8 = vcmp.eq.s32.totalorder %v394_v31, %v3489_v2  ;;  %vm572_vm9 = vcmp.eq.s32.totalorder %v394_v31, %v3494_v7  ;;  %vm569_vm10 = vcmp.eq.s32.totalorder %v391_v32, %v3489_v2  ;;  %vm570_vm11 = vcmp.eq.s32.totalorder %v391_v32, %v3494_v7  ;;  %v2978_v31 = vld [vmem:[%s3291_s15 + $0xc0] ss:$16 sps:$4 sm:$0xff]   ;;  %v2982_v32 = vld [vmem:[%s3291_s15 + $0xe4] ss:$16 sps:$4 sm:$0xff]  }
  0xed   : > { %vm2564_vm12 = vmpackc.low %vm572_vm9, %vm570_vm11 }
  0xee   : > { %vm2566_vm13 = vmpackc.low %vm571_vm8, %vm569_vm10  ;;  %2565 = vmatprep.subr.msk.bf16.mxu1 %vm2564_vm12, %v3154_v10 }
  0xef   : > { %v490_v33 = vpop.permute.xlu1 %489  ;;  %2567 = vmatpush1.bf16.msk.msra.mxu1 %vm2566_vm13, %v3154_v10  ;;  %v487_v34 = vpop.permute.xlu0 %486 }
  0xf0   : > { %vm635_vm14 = vcmp.eq.s32.totalorder %v490_v33, %v3489_v2  ;;  %vm636_vm15 = vcmp.eq.s32.totalorder %v490_v33, %v3494_v7  ;;  %vm633_vm1 = vcmp.eq.s32.totalorder %v487_v34, %v3489_v2  ;;  %vm634_vm2 = vcmp.eq.s32.totalorder %v487_v34, %v3494_v7  ;;  %v2981_v33 = vld [vmem:[%s3291_s15 + $0xc8] ss:$16 sps:$4 sm:$0xff]   ;;  %v2985_v34 = vld [vmem:[%s3291_s15 + $0xec] ss:$16 sps:$4 sm:$0xff]  }
  0xf1   : > { %vm2628_vm0 = vmpackc.low %vm636_vm15, %vm634_vm2 }
  0xf2   : > { %vm2630_vm3 = vmpackc.low %vm635_vm14, %vm633_vm1  ;;  %2629 = vmatprep.subr.msk.bf16.mxu0 %vm2628_vm0, %v3154_v10 }
  0xf3   : > { %v400_v35 = vpop.permute.xlu1 %399  ;;  %2631 = vmatpush1.bf16.msk.msra.mxu0 %vm2630_vm3, %v3154_v10  ;;  %v397_v36 = vpop.permute.xlu0 %396 }
  0xf4   : > { %vm575_vm5 = vcmp.eq.s32.totalorder %v400_v35, %v3489_v2  ;;  %vm576_vm4 = vcmp.eq.s32.totalorder %v400_v35, %v3494_v7  ;;  %vm573_vm6 = vcmp.eq.s32.totalorder %v397_v36, %v3489_v2  ;;  %vm574_vm7 = vcmp.eq.s32.totalorder %v397_v36, %v3494_v7  ;;  %v2984_v35 = vld [vmem:[%s3291_s15 + $0xe0] ss:$16 sps:$4 sm:$0xff]   ;;  %v2988_v36 = vld [vmem:[%s3291_s15 + $0x104] ss:$16 sps:$4 sm:$0xff]  }
  0xf5   : > { %vm2568_vm8 = vmpackc.low %vm576_vm4, %vm574_vm7 }
  0xf6   : > { %vm2570_vm9 = vmpackc.low %vm575_vm5, %vm573_vm6  ;;  %2569 = vmatprep.subr.msk.bf16.mxu1 %vm2568_vm8, %v3154_v10 }
  0xf7   : > { %v496_v37 = vpop.permute.xlu1 %495  ;;  %2571 = vmatpush1.bf16.msk.msra.mxu1 %vm2570_vm9, %v3154_v10  ;;  %v493_v38 = vpop.permute.xlu0 %492 }
  0xf8   : > { %vm639_vm10 = vcmp.eq.s32.totalorder %v496_v37, %v3489_v2  ;;  %vm640_vm11 = vcmp.eq.s32.totalorder %v496_v37, %v3494_v7  ;;  %vm637_vm12 = vcmp.eq.s32.totalorder %v493_v38, %v3489_v2  ;;  %vm638_vm13 = vcmp.eq.s32.totalorder %v493_v38, %v3494_v7  ;;  %v2987_v37 = vld [vmem:[%s3291_s15 + $0xe8] ss:$16 sps:$4 sm:$0xff]   ;;  %v2991_v38 = vld [vmem:[%s3291_s15 + $0x10c] ss:$16 sps:$4 sm:$0xff]  }
  0xf9   : > { %vm2632_vm14 = vmpackc.low %vm640_vm11, %vm638_vm13 }
  0xfa   : > { %vm2634_vm15 = vmpackc.low %vm639_vm10, %vm637_vm12  ;;  %2633 = vmatprep.subr.msk.bf16.mxu0 %vm2632_vm14, %v3154_v10 }
  0xfb   : > { %v406_v39 = vpop.permute.xlu1 %405  ;;  %2635 = vmatpush1.bf16.msk.msra.mxu0 %vm2634_vm15, %v3154_v10  ;;  %v403_v40 = vpop.permute.xlu0 %402 }
  0xfc   : > { %vm579_vm1 = vcmp.eq.s32.totalorder %v406_v39, %v3489_v2  ;;  %vm580_vm2 = vcmp.eq.s32.totalorder %v406_v39, %v3494_v7  ;;  %vm577_vm0 = vcmp.eq.s32.totalorder %v403_v40, %v3489_v2  ;;  %vm578_vm3 = vcmp.eq.s32.totalorder %v403_v40, %v3494_v7  ;;  %v2990_v39 = vld [vmem:[%s3291_s15 + $0x100] ss:$16 sps:$4 sm:$0xff]   ;;  %v2994_v40 = vld [vmem:[%s3291_s15 + $0x124] ss:$16 sps:$4 sm:$0xff]  }
  0xfd   : > { %vm2572_vm5 = vmpackc.low %vm580_vm2, %vm578_vm3 }
  0xfe   : > { %vm2574_vm4 = vmpackc.low %vm579_vm1, %vm577_vm0  ;;  %2573 = vmatprep.subr.msk.bf16.mxu1 %vm2572_vm5, %v3154_v10 }
  0xff   : > { %v502_v41 = vpop.permute.xlu1 %501  ;;  %2575 = vmatpush1.bf16.msk.msra.mxu1 %vm2574_vm4, %v3154_v10  ;;  %v499_v42 = vpop.permute.xlu0 %498 }
 0x100   : > { %vm643_vm6 = vcmp.eq.s32.totalorder %v502_v41, %v3489_v2  ;;  %vm644_vm7 = vcmp.eq.s32.totalorder %v502_v41, %v3494_v7  ;;  %vm641_vm8 = vcmp.eq.s32.totalorder %v499_v42, %v3489_v2  ;;  %vm642_vm9 = vcmp.eq.s32.totalorder %v499_v42, %v3494_v7  ;;  %v2993_v41 = vld [vmem:[%s3291_s15 + $0x108] ss:$16 sps:$4 sm:$0xff]   ;;  %v2997_v42 = vld [vmem:[%s3291_s15 + $0x12c] ss:$16 sps:$4 sm:$0xff]  }
 0x101   : > { %vm2636_vm10 = vmpackc.low %vm644_vm7, %vm642_vm9 }
 0x102   : > { %vm2638_vm11 = vmpackc.low %vm643_vm6, %vm641_vm8  ;;  %2637 = vmatprep.subr.msk.bf16.mxu0 %vm2636_vm10, %v3154_v10 }
 0x103   : > { %v412_v43 = vpop.permute.xlu1 %411  ;;  %2639 = vmatpush1.bf16.msk.msra.mxu0 %vm2638_vm11, %v3154_v10  ;;  %v409_v44 = vpop.permute.xlu0 %408 }
 0x104   : > { %vm583_vm12 = vcmp.eq.s32.totalorder %v412_v43, %v3489_v2  ;;  %vm584_vm13 = vcmp.eq.s32.totalorder %v412_v43, %v3494_v7  ;;  %vm581_vm14 = vcmp.eq.s32.totalorder %v409_v44, %v3489_v2  ;;  %vm582_vm15 = vcmp.eq.s32.totalorder %v409_v44, %v3494_v7  ;;  %v2996_v43 = vld [vmem:[%s3291_s15 + $0x120] ss:$16 sps:$4 sm:$0xff]   ;;  %v3000_v44 = vld [vmem:[%s3291_s15 + $0x144] ss:$16 sps:$4 sm:$0xff]  }
 0x105   : > { %vm2576_vm1 = vmpackc.low %vm584_vm13, %vm582_vm15 }
 0x106   : > { %vm2578_vm2 = vmpackc.low %vm583_vm12, %vm581_vm14  ;;  %2577 = vmatprep.subr.msk.bf16.mxu1 %vm2576_vm1, %v3154_v10 }
 0x107   : > { %v508_v45 = vpop.permute.xlu1 %507  ;;  %2579 = vmatpush1.bf16.msk.msra.mxu1 %vm2578_vm2, %v3154_v10  ;;  %v505_v46 = vpop.permute.xlu0 %504 }
 0x108   : > { %vm647_vm0 = vcmp.eq.s32.totalorder %v508_v45, %v3489_v2  ;;  %vm648_vm3 = vcmp.eq.s32.totalorder %v508_v45, %v3494_v7  ;;  %vm645_vm5 = vcmp.eq.s32.totalorder %v505_v46, %v3489_v2  ;;  %vm646_vm4 = vcmp.eq.s32.totalorder %v505_v46, %v3494_v7  ;;  %v2999_v45 = vld [vmem:[%s3291_s15 + $0x128] ss:$16 sps:$4 sm:$0xff]   ;;  %v3003_v46 = vld [vmem:[%s3291_s15 + $0x14c] ss:$16 sps:$4 sm:$0xff]  }
 0x109   : > { %vm2640_vm6 = vmpackc.low %vm648_vm3, %vm646_vm4 }
 0x10a   : > { %vm2642_vm7 = vmpackc.low %vm647_vm0, %vm645_vm5  ;;  %2641 = vmatprep.subr.msk.bf16.mxu0 %vm2640_vm6, %v3154_v10 }
 0x10b   : > { %v418_v47 = vpop.permute.xlu1 %417  ;;  %2643 = vmatpush1.bf16.msk.msra.mxu0 %vm2642_vm7, %v3154_v10  ;;  %v415_v48 = vpop.permute.xlu0 %414 }
 0x10c   : > { %vm587_vm8 = vcmp.eq.s32.totalorder %v418_v47, %v3489_v2  ;;  %vm588_vm9 = vcmp.eq.s32.totalorder %v418_v47, %v3494_v7  ;;  %vm585_vm10 = vcmp.eq.s32.totalorder %v415_v48, %v3489_v2  ;;  %vm586_vm11 = vcmp.eq.s32.totalorder %v415_v48, %v3494_v7  ;;  %v3002_v47 = vld [vmem:[%s3291_s15 + $0x140] ss:$16 sps:$4 sm:$0xff]   ;;  %v3006_v48 = vld [vmem:[%s3291_s15 + $0x164] ss:$16 sps:$4 sm:$0xff]  }
 0x10d   : > { %vm2580_vm12 = vmpackc.low %vm588_vm9, %vm586_vm11 }
 0x10e   : > { %vm2582_vm13 = vmpackc.low %vm587_vm8, %vm585_vm10  ;;  %2581 = vmatprep.subr.msk.bf16.mxu1 %vm2580_vm12, %v3154_v10 }
 0x10f   : > { %v514_v49 = vpop.permute.xlu1 %513  ;;  %2583 = vmatpush1.bf16.msk.msra.mxu1 %vm2582_vm13, %v3154_v10  ;;  %v511_v50 = vpop.permute.xlu0 %510 }
 0x110   : > { %vm651_vm14 = vcmp.eq.s32.totalorder %v514_v49, %v3489_v2  ;;  %vm652_vm15 = vcmp.eq.s32.totalorder %v514_v49, %v3494_v7  ;;  %vm649_vm1 = vcmp.eq.s32.totalorder %v511_v50, %v3489_v2  ;;  %vm650_vm2 = vcmp.eq.s32.totalorder %v511_v50, %v3494_v7  ;;  %v3005_v49 = vld [vmem:[%s3291_s15 + $0x148] ss:$16 sps:$4 sm:$0xff]   ;;  %v3009_v50 = vld [vmem:[%s3291_s15 + $0x16c] ss:$16 sps:$4 sm:$0xff]  }
 0x111   : > { %vm2644_vm0 = vmpackc.low %vm652_vm15, %vm650_vm2 }
 0x112   : > { %vm2646_vm3 = vmpackc.low %vm651_vm14, %vm649_vm1  ;;  %2645 = vmatprep.subr.msk.bf16.mxu0 %vm2644_vm0, %v3154_v10 }
 0x113   : > { %v424_v51 = vpop.permute.xlu1 %423  ;;  %2647 = vmatpush1.bf16.msk.msra.mxu0 %vm2646_vm3, %v3154_v10  ;;  %v421_v52 = vpop.permute.xlu0 %420 }
 0x114   : > { %vm591_vm5 = vcmp.eq.s32.totalorder %v424_v51, %v3489_v2  ;;  %vm592_vm4 = vcmp.eq.s32.totalorder %v424_v51, %v3494_v7  ;;  %vm589_vm6 = vcmp.eq.s32.totalorder %v421_v52, %v3489_v2  ;;  %vm590_vm7 = vcmp.eq.s32.totalorder %v421_v52, %v3494_v7  ;;  %v3008_v51 = vld [vmem:[%s3291_s15 + $0x160] ss:$16 sps:$4 sm:$0xff]   ;;  %v3012_v52 = vld [vmem:[%s3291_s15 + $0x184] ss:$16 sps:$4 sm:$0xff]  }
 0x115   : > { %vm2584_vm8 = vmpackc.low %vm592_vm4, %vm590_vm7 }
 0x116   : > { %vm2586_vm9 = vmpackc.low %vm591_vm5, %vm589_vm6  ;;  %2585 = vmatprep.subr.msk.bf16.mxu1 %vm2584_vm8, %v3154_v10 }
 0x117   : > { %v520_v53 = vpop.permute.xlu1 %519  ;;  %2587 = vmatpush1.bf16.msk.msra.mxu1 %vm2586_vm9, %v3154_v10  ;;  %v517_v54 = vpop.permute.xlu0 %516 }
 0x118   : > { %vm655_vm10 = vcmp.eq.s32.totalorder %v520_v53, %v3489_v2  ;;  %vm656_vm11 = vcmp.eq.s32.totalorder %v520_v53, %v3494_v7  ;;  %vm653_vm12 = vcmp.eq.s32.totalorder %v517_v54, %v3489_v2  ;;  %vm654_vm13 = vcmp.eq.s32.totalorder %v517_v54, %v3494_v7  ;;  %v3011_v53 = vld [vmem:[%s3291_s15 + $0x168] ss:$16 sps:$4 sm:$0xff]   ;;  %v3015_v54 = vld [vmem:[%s3291_s15 + $0x18c] ss:$16 sps:$4 sm:$0xff]  }
 0x119   : > { %vm2648_vm14 = vmpackc.low %vm656_vm11, %vm654_vm13 }
 0x11a   : > { %vm2650_vm15 = vmpackc.low %vm655_vm10, %vm653_vm12  ;;  %2649 = vmatprep.subr.msk.bf16.mxu0 %vm2648_vm14, %v3154_v10 }
 0x11b   : > { %v430_v55 = vpop.permute.xlu1 %429  ;;  %2651 = vmatpush1.bf16.msk.msra.mxu0 %vm2650_vm15, %v3154_v10  ;;  %v427_v56 = vpop.permute.xlu0 %426 }
 0x11c   : > { %vm595_vm1 = vcmp.eq.s32.totalorder %v430_v55, %v3489_v2  ;;  %vm596_vm2 = vcmp.eq.s32.totalorder %v430_v55, %v3494_v7  ;;  %vm593_vm0 = vcmp.eq.s32.totalorder %v427_v56, %v3489_v2  ;;  %vm594_vm3 = vcmp.eq.s32.totalorder %v427_v56, %v3494_v7  ;;  %v3014_v55 = vld [vmem:[%s3291_s15 + $0x180] ss:$16 sps:$4 sm:$0xff]   ;;  %v3018_v56 = vld [vmem:[%s3291_s15 + $0x1a4] ss:$16 sps:$4 sm:$0xff]  }
 0x11d   : > { %vm2588_vm5 = vmpackc.low %vm596_vm2, %vm594_vm3 }
 0x11e   : > { %vm2590_vm4 = vmpackc.low %vm595_vm1, %vm593_vm0  ;;  %2589 = vmatprep.subr.msk.bf16.mxu1 %vm2588_vm5, %v3154_v10 }
 0x11f   : > { %v526_v57 = vpop.permute.xlu1 %525  ;;  %2591 = vmatpush1.bf16.msk.msra.mxu1 %vm2590_vm4, %v3154_v10  ;;  %v523_v58 = vpop.permute.xlu0 %522 }
 0x120   : > { %vm659_vm6 = vcmp.eq.s32.totalorder %v526_v57, %v3489_v2  ;;  %vm660_vm7 = vcmp.eq.s32.totalorder %v526_v57, %v3494_v7  ;;  %vm657_vm8 = vcmp.eq.s32.totalorder %v523_v58, %v3489_v2  ;;  %vm658_vm9 = vcmp.eq.s32.totalorder %v523_v58, %v3494_v7  ;;  %v3017_v57 = vld [vmem:[%s3291_s15 + $0x188] ss:$16 sps:$4 sm:$0xff]   ;;  %v3021_v58 = vld [vmem:[%s3291_s15 + $0x1ac] ss:$16 sps:$4 sm:$0xff]  }
 0x121   : > { %vm2652_vm10 = vmpackc.low %vm660_vm7, %vm658_vm9 }
 0x122   : > { %vm2654_vm11 = vmpackc.low %vm659_vm6, %vm657_vm8  ;;  %2653 = vmatprep.subr.msk.bf16.mxu0 %vm2652_vm10, %v3154_v10 }
 0x123   : > { %v436_v59 = vpop.permute.xlu1 %435  ;;  %2655 = vmatpush1.bf16.msk.msra.mxu0 %vm2654_vm11, %v3154_v10  ;;  %v433_v60 = vpop.permute.xlu0 %432 }
 0x124   : > { %vm599_vm12 = vcmp.eq.s32.totalorder %v436_v59, %v3489_v2  ;;  %vm600_vm13 = vcmp.eq.s32.totalorder %v436_v59, %v3494_v7  ;;  %vm597_vm14 = vcmp.eq.s32.totalorder %v433_v60, %v3489_v2  ;;  %vm598_vm15 = vcmp.eq.s32.totalorder %v433_v60, %v3494_v7  ;;  %v3020_v59 = vld [vmem:[%s3291_s15 + $0x1a0] ss:$16 sps:$4 sm:$0xff]   ;;  %v3024_v60 = vld [vmem:[%s3291_s15 + $0x1c4] ss:$16 sps:$4 sm:$0xff]  }
 0x125   : > { %vm2592_vm1 = vmpackc.low %vm600_vm13, %vm598_vm15 }
 0x126   : > { %vm2594_vm2 = vmpackc.low %vm599_vm12, %vm597_vm14  ;;  %2593 = vmatprep.subr.msk.bf16.mxu1 %vm2592_vm1, %v3154_v10 }
 0x127   : > { %v532_v61 = vpop.permute.xlu1 %531  ;;  %2595 = vmatpush1.bf16.msk.msra.mxu1 %vm2594_vm2, %v3154_v10  ;;  %v529_v62 = vpop.permute.xlu0 %528 }
 0x128   : > { %vm663_vm0 = vcmp.eq.s32.totalorder %v532_v61, %v3489_v2  ;;  %vm664_vm3 = vcmp.eq.s32.totalorder %v532_v61, %v3494_v7  ;;  %vm661_vm5 = vcmp.eq.s32.totalorder %v529_v62, %v3489_v2  ;;  %vm662_vm4 = vcmp.eq.s32.totalorder %v529_v62, %v3494_v7  ;;  %v3023_v61 = vld [vmem:[%s3291_s15 + $0x1a8] ss:$16 sps:$4 sm:$0xff]   ;;  %v3027_v62 = vld [vmem:[%s3291_s15 + $0x1cc] ss:$16 sps:$4 sm:$0xff]  }
 0x129   : > { %vm2656_vm6 = vmpackc.low %vm664_vm3, %vm662_vm4 }
 0x12a   : > { %vm2658_vm7 = vmpackc.low %vm663_vm0, %vm661_vm5  ;;  %2657 = vmatprep.subr.msk.bf16.mxu0 %vm2656_vm6, %v3154_v10 }
 0x12b   : > { %v442_v63 = vpop.permute.xlu1 %441  ;;  %2659 = vmatpush1.bf16.msk.msra.mxu0 %vm2658_vm7, %v3154_v10  ;;  %v439_v0 = vpop.permute.xlu0 %438 }
 0x12c   : > { %vm603_vm8 = vcmp.eq.s32.totalorder %v442_v63, %v3489_v2  ;;  %vm604_vm9 = vcmp.eq.s32.totalorder %v442_v63, %v3494_v7  ;;  %vm601_vm10 = vcmp.eq.s32.totalorder %v439_v0, %v3489_v2  ;;  %vm602_vm11 = vcmp.eq.s32.totalorder %v439_v0, %v3494_v7  ;;  %v3026_v63 = vld [vmem:[%s3291_s15 + $0x1c0] ss:$16 sps:$4 sm:$0xff]   ;;  %v3030_v0 = vld [vmem:[%s3291_s15 + $0x1e4] ss:$16 sps:$4 sm:$0xff]  }
 0x12d   : > { %vm2596_vm12 = vmpackc.low %vm604_vm9, %vm602_vm11 }
 0x12e   : > { %vm2598_vm13 = vmpackc.low %vm603_vm8, %vm601_vm10  ;;  %2597 = vmatprep.subr.msk.bf16.mxu1 %vm2596_vm12, %v3154_v10 }
 0x12f   : > { %v538_v1 = vpop.permute.xlu1 %537  ;;  %2599 = vmatpush1.bf16.msk.msra.mxu1 %vm2598_vm13, %v3154_v10  ;;  %v535_v3 = vpop.permute.xlu0 %534 }
 0x130   : > { %vm667_vm14 = vcmp.eq.s32.totalorder %v538_v1, %v3489_v2  ;;  %vm668_vm15 = vcmp.eq.s32.totalorder %v538_v1, %v3494_v7  ;;  %vm665_vm1 = vcmp.eq.s32.totalorder %v535_v3, %v3489_v2  ;;  %vm666_vm2 = vcmp.eq.s32.totalorder %v535_v3, %v3494_v7  ;;  %v3029_v1 = vld [vmem:[%s3291_s15 + $0x1c8] ss:$16 sps:$4 sm:$0xff]   ;;  %v3033_v3 = vld [vmem:[%s3291_s15 + $0x1ec] ss:$16 sps:$4 sm:$0xff]  }
 0x131   : > { %vm2660_vm0 = vmpackc.low %vm668_vm15, %vm666_vm2 }
 0x132   : > { %vm2662_vm3 = vmpackc.low %vm667_vm14, %vm665_vm1  ;;  %2661 = vmatprep.subr.msk.bf16.mxu0 %vm2660_vm0, %v3154_v10 }
 0x133   : > { %v448_v4 = vpop.permute.xlu1 %447  ;;  %2663 = vmatpush1.bf16.msk.msra.mxu0 %vm2662_vm3, %v3154_v10  ;;  %v445_v5 = vpop.permute.xlu0 %444 }
 0x134   : > { %vm607_vm5 = vcmp.eq.s32.totalorder %v448_v4, %v3489_v2  ;;  %vm608_vm4 = vcmp.eq.s32.totalorder %v448_v4, %v3494_v7  ;;  %vm605_vm6 = vcmp.eq.s32.totalorder %v445_v5, %v3489_v2  ;;  %vm606_vm7 = vcmp.eq.s32.totalorder %v445_v5, %v3494_v7  ;;  %v3032_v4 = vld [vmem:[%s3291_s15 + $0x1e0] ss:$16 sps:$4 sm:$0xff]   ;;  %v3035_v5 = vld [vmem:[%s3291_s15 + $0x1e8] ss:$16 sps:$4 sm:$0xff]  }
 0x135   : > { %vm2600_vm8 = vmpackc.low %vm608_vm4, %vm606_vm7 }
 0x136   : > { %vm2602_vm9 = vmpackc.low %vm607_vm5, %vm605_vm6  ;;  %2601 = vmatprep.subr.msk.bf16.mxu1 %vm2600_vm8, %v3154_v10 }
 0x137   : > { %v544_v8 = vpop.permute.xlu1 %543  ;;  %2603 = vmatpush1.bf16.msk.msra.mxu1 %vm2602_vm9, %v3154_v10  ;;  %v541_v9 = vpop.permute.xlu0 %540 }
 0x138   : > { %vm671_vm10 = vcmp.eq.s32.totalorder %v544_v8, %v3489_v2  ;;  %vm672_vm11 = vcmp.eq.s32.totalorder %v544_v8, %v3494_v7  ;;  %vm669_vm12 = vcmp.eq.s32.totalorder %v541_v9, %v3489_v2  ;;  %vm670_vm13 = vcmp.eq.s32.totalorder %v541_v9, %v3494_v7  ;;  %v2952_v2 = vld [vmem:[%s3291_s15 + $0x44] ss:$16 sps:$4 sm:$0xff]   ;;  %v2951_v7 = vld [vmem:[%s3291_s15 + $0x28] ss:$16 sps:$4 sm:$0xff]  }
 0x139   : > { %vm2664_vm14 = vmpackc.low %vm672_vm11, %vm670_vm13 }
 0x13a   : > { %vm2666_vm15 = vmpackc.low %vm671_vm10, %vm669_vm12  ;;  %2665 = vmatprep.subr.msk.bf16.mxu0 %vm2664_vm14, %v3154_v10  ;;  %1474 = vmatmul.mubr.bf16.vlgmr.msra.gmra.mrb[0].mxu1 %v2940_v6 }
 0x13b   : > { %2667 = vmatpush1.bf16.msk.msra.mxu0 %vm2666_vm15, %v3154_v10  ;;  %1483 = vmatprep.mubr.bf16.mxu1 %v2946_v11  ;;  %v2958_v10 = vld [vmem:[%s3291_s15 + $0x64] ss:$16 sps:$4 sm:$0xff]   ;;  %s3754_s15 = scalar_lea.vmem [#allocation6], %s2346_s7  ;;  %s2677_s7 = sshll.u32 %s3140_s12, 13 }
 0x13c   : > { %s2231_s20 = sshll.u32 %s3754_s15, 4  ;;  %s3822_s27 = scalar_lea.hbm %s3878_s2, %s2677_s7  ;;  %s3824_s20 = int_to_ptr.vmem [resolvable:$true] %s2231_s20 }
 0x13d   : > { %s2215_s12 = scalar_lea.sflag [#allocation5], %s3285_s3  ;;  %s3066_s28 = scalar_lea.vmem %s3824_s20, 8192 }
 0x13e   : > { %1667 = vmatmul.mubr.bf16.vlgmr.msra.gmra.mrb[0].mxu0 %v2943_v12  ;;  %p3067_p8 = scmp.ne.s32.totalorder %s3824_s20, %s3066_s28  ;;  %p3073_p6 = scmp.lt.s32.totalorder %s3824_s20, %s3071_s8 }
 0x13f   : > { %1676 = vmatprep.mubr.bf16.mxu0 %v2949_v13  ;;  %p3074_p13 = scmp.lt.s32.totalorder %s3072_s30, %s3066_s28 }
 0x140   : > { %p3068_p11 = pnand %p3067_p8, %p3886_p9 }
 0x141   : > { %p3075_p2 = por %p3074_p13, %p3073_p6 }
 0x142   : > { %1484 = vmatmul.mubr.bf16.gmra.mrb[4].mxu1 %v2948_v14  ;;  %p3069_p0 = pneg %p3068_p11 }
 0x143   : > { %1493 = vmatprep.mubr.bf16.mxu1 %v2952_v2 }
 0x144   : > { %p3076_p5 = pnand %p3075_p2, %p3069_p0 }
 0x146   : > { %1677 = vmatmul.mubr.bf16.gmra.mrb[4].mxu0 %v2951_v7 }
 0x147   : > { %1686 = vmatprep.mubr.bf16.mxu0 %v2955_v15 }
 0x14a   : > { %1494 = vmatmul.mubr.bf16.gmra.mrb[8].mxu1 %v2954_v16 }
 0x14b   : > { %1503 = vmatprep.mubr.bf16.mxu1 %v2958_v10 }
 0x14e   : > { %1687 = vmatmul.mubr.bf16.gmra.mrb[8].mxu0 %v2957_v17 }
 0x14f   : > { %1696 = vmatprep.mubr.bf16.mxu0 %v2961_v18 }
 0x152   : > { %1504 = vmatmul.mubr.bf16.gmra.mrb[12].mxu1 %v2960_v19 }
 0x153   : > { %1513 = vmatprep.mubr.bf16.mxu1 %v2964_v20 }
 0x156   : > { %1697 = vmatmul.mubr.bf16.gmra.mrb[12].mxu0 %v2963_v21 }
 0x157   : > { %1706 = vmatprep.mubr.bf16.mxu0 %v2967_v22 }
 0x15a   : > { %1514 = vmatmul.mubr.bf16.gmra.mrb[16].mxu1 %v2966_v23 }
 0x15b   : > { %1523 = vmatprep.mubr.bf16.mxu1 %v2970_v24 }
 0x15e   : > { %1707 = vmatmul.mubr.bf16.gmra.mrb[16].mxu0 %v2969_v25 }
 0x15f   : > { %1716 = vmatprep.mubr.bf16.mxu0 %v2973_v26 }
 0x162   : > { %1524 = vmatmul.mubr.bf16.gmra.mrb[20].mxu1 %v2972_v27 }
 0x163   : > { %1533 = vmatprep.mubr.bf16.mxu1 %v2976_v28 }
 0x166   : > { %1717 = vmatmul.mubr.bf16.gmra.mrb[20].mxu0 %v2975_v29 }
 0x167   : > { %1726 = vmatprep.mubr.bf16.mxu0 %v2979_v30 }
 0x16a   : > { %1534 = vmatmul.mubr.bf16.gmra.mrb[24].mxu1 %v2978_v31 }
 0x16b   : > { %1543 = vmatprep.mubr.bf16.mxu1 %v2982_v32 }
 0x16e   : > { %1727 = vmatmul.mubr.bf16.gmra.mrb[24].mxu0 %v2981_v33 }
 0x16f   : > { %1736 = vmatprep.mubr.bf16.mxu0 %v2985_v34 }
 0x172   : > { %1544 = vmatmul.mubr.bf16.gmra.mrb[28].mxu1 %v2984_v35 }
 0x173   : > { %1553 = vmatprep.mubr.bf16.mxu1 %v2988_v36 }
 0x176   : > { %1737 = vmatmul.mubr.bf16.gmra.mrb[28].mxu0 %v2987_v37 }
 0x177   : > { %1746 = vmatprep.mubr.bf16.mxu0 %v2991_v38 }
 0x17a   : > { %1554 = vmatmul.mubr.bf16.gmra.mrb[32].mxu1 %v2990_v39 }
 0x17b   : > { %1563 = vmatprep.mubr.bf16.mxu1 %v2994_v40 }
 0x17e   : > { %1747 = vmatmul.mubr.bf16.gmra.mrb[32].mxu0 %v2993_v41 }
 0x17f   : > { %1756 = vmatprep.mubr.bf16.mxu0 %v2997_v42 }
 0x182   : > { %1564 = vmatmul.mubr.bf16.gmra.mrb[36].mxu1 %v2996_v43 }
 0x183   : > { %1573 = vmatprep.mubr.bf16.mxu1 %v3000_v44 }
 0x186   : > { %1757 = vmatmul.mubr.bf16.gmra.mrb[36].mxu0 %v2999_v45 }
 0x187   : > { %1766 = vmatprep.mubr.bf16.mxu0 %v3003_v46 }
 0x18a   : > { %1574 = vmatmul.mubr.bf16.gmra.mrb[40].mxu1 %v3002_v47 }
 0x18b   : > { %1583 = vmatprep.mubr.bf16.mxu1 %v3006_v48 }
 0x18e   : > { %1767 = vmatmul.mubr.bf16.gmra.mrb[40].mxu0 %v3005_v49 }
 0x18f   : > { %1776 = vmatprep.mubr.bf16.mxu0 %v3009_v50 }
 0x192   : > { %1584 = vmatmul.mubr.bf16.gmra.mrb[44].mxu1 %v3008_v51 }
 0x193   : > { %1593 = vmatprep.mubr.bf16.mxu1 %v3012_v52 }
 0x196   : > { %1777 = vmatmul.mubr.bf16.gmra.mrb[44].mxu0 %v3011_v53 }
 0x197   : > { %1786 = vmatprep.mubr.bf16.mxu0 %v3015_v54 }
 0x19a   : > { %1594 = vmatmul.mubr.bf16.gmra.mrb[48].mxu1 %v3014_v55 }
 0x19b   : > { %1603 = vmatprep.mubr.bf16.mxu1 %v3018_v56 }
 0x19e   : > { %1787 = vmatmul.mubr.bf16.gmra.mrb[48].mxu0 %v3017_v57 }
 0x19f   : > { %1796 = vmatprep.mubr.bf16.mxu0 %v3021_v58 }
 0x1a2   : > { %1604 = vmatmul.mubr.bf16.gmra.mrb[52].mxu1 %v3020_v59 }
 0x1a3   : > { %1613 = vmatprep.mubr.bf16.mxu1 %v3024_v60 }
 0x1a6   : > { %1797 = vmatmul.mubr.bf16.gmra.mrb[52].mxu0 %v3023_v61 }
 0x1a7   : > { %1806 = vmatprep.mubr.bf16.mxu0 %v3027_v62 }
 0x1aa   : > { %1614 = vmatmul.mubr.bf16.gmra.mrb[56].mxu1 %v3026_v63 }
 0x1ab   : > { %1623 = vmatprep.mubr.bf16.mxu1 %v3030_v0 }
 0x1ae   : > { %1807 = vmatmul.mubr.bf16.gmra.mrb[56].mxu0 %v3029_v1 }
 0x1af   : > { %1816 = vmatprep.mubr.bf16.mxu0 %v3033_v3 }
 0x1b2   : > { %1624 = vmatmul.mubr.bf16.gmra.mrb[60].mxu1 %v3032_v4 }
 0x1b6   : > { %1817 = vmatmul.mubr.bf16.gmra.mrb[60].mxu0 %v3035_v5 }
 0x20d   : > { %v1475_v6 = vpop.f32.mrb[0].mxu1 }
 0x20e   : > { %v1477_v8 = vpop.f32.mrb[1].mxu1 }
 0x20f   : > { %v1479_v9 = vpop.f32.mrb[2].mxu1 }
 0x210   : > { %v1481_v11 = vpop.f32.mrb[3].mxu1 }
 0x211   : > { %v1668_v12 = vpop.f32.mrb[0].mxu0 }
 0x212   : > { %v1669_v13 = vadd.f32 %v1668_v12, %v1475_v6  ;;  %v1670_v14 = vpop.f32.mrb[1].mxu0 }
 0x213   : > { %v1671_v2 = vadd.f32 %v1670_v14, %v1477_v8  ;;  %v1672_v7 = vpop.f32.mrb[2].mxu0 }
 0x214   : > { %v2022_v15 = vadd.f32 0.5, %v1669_v13  ;;  %v1673_v16 = vadd.f32 %v1672_v7, %v1479_v9  ;;  %v1674_v10 = vpop.f32.mrb[3].mxu0 }
 0x215   : > { %v2023_v17 = vadd.f32 0.5, %v1671_v2  ;;  %v1675_v18 = vadd.f32 %v1674_v10, %v1481_v11  ;;  %v1485_v19 = vpop.f32.mrb[4].mxu1 }
 0x216   : > { %v2742_v20 = vtrunc.f32 %v2022_v15  ;;  %v2024_v21 = vadd.f32 0.5, %v1673_v16  ;;  %v1487_v22 = vpop.f32.mrb[5].mxu1 }
 0x217   : > { %v2744_v23 = vtrunc.f32 %v2023_v17  ;;  %v2025_v24 = vadd.f32 0.5, %v1675_v18  ;;  %v1489_v25 = vpop.f32.mrb[6].mxu1 }
 0x218   : > { %v2743_v26 = vcvt.f32.s32 %v2742_v20  ;;  %v2746_v27 = vtrunc.f32 %v2024_v21  ;;  %v1491_v28 = vpop.f32.mrb[7].mxu1 }
 0x219   : > { %v2745_v29 = vcvt.f32.s32 %v2744_v23  ;;  %v2748_v30 = vtrunc.f32 %v2025_v24  ;;  %v1678_v31 = vpop.f32.mrb[4].mxu0 }
 0x21a   : > { %2150 = vst [vmem:[%s3754_s15] sm:$0xff] %v2743_v26  ;;  %v2747_v32 = vcvt.f32.s32 %v2746_v27  ;;  %v1679_v33 = vadd.f32 %v1678_v31, %v1485_v19  ;;  %v1680_v34 = vpop.f32.mrb[5].mxu0 }
 0x21b   : > { %2151 = vst [vmem:[%s3754_s15 + $0x8] sm:$0xff] %v2745_v29  ;;  %v2749_v35 = vcvt.f32.s32 %v2748_v30  ;;  %v1681_v36 = vadd.f32 %v1680_v34, %v1487_v22  ;;  %v1682_v37 = vpop.f32.mrb[6].mxu0 }
 0x21c   : > { %2152 = vst [vmem:[%s3754_s15 + $0x10] sm:$0xff] %v2747_v32  ;;  %v2026_v38 = vadd.f32 0.5, %v1679_v33  ;;  %v1683_v39 = vadd.f32 %v1682_v37, %v1489_v25  ;;  %v1684_v40 = vpop.f32.mrb[7].mxu0 }
 0x21d   : > { %2153 = vst [vmem:[%s3754_s15 + $0x18] sm:$0xff] %v2749_v35  ;;  %v2027_v41 = vadd.f32 0.5, %v1681_v36  ;;  %v1685_v42 = vadd.f32 %v1684_v40, %v1491_v28  ;;  %v1495_v43 = vpop.f32.mrb[8].mxu1 }
 0x21e   : > { %v2750_v44 = vtrunc.f32 %v2026_v38  ;;  %v2028_v45 = vadd.f32 0.5, %v1683_v39  ;;  %v1497_v46 = vpop.f32.mrb[9].mxu1 }
 0x21f   : > { %v2752_v47 = vtrunc.f32 %v2027_v41  ;;  %v2029_v48 = vadd.f32 0.5, %v1685_v42  ;;  %v1499_v49 = vpop.f32.mrb[10].mxu1 }
 0x220   : > { %v2751_v50 = vcvt.f32.s32 %v2750_v44  ;;  %v2754_v51 = vtrunc.f32 %v2028_v45  ;;  %v1501_v52 = vpop.f32.mrb[11].mxu1 }
 0x221   : > { %v2753_v53 = vcvt.f32.s32 %v2752_v47  ;;  %v2756_v54 = vtrunc.f32 %v2029_v48  ;;  %v1688_v55 = vpop.f32.mrb[8].mxu0 }
 0x222   : > { %2154 = vst [vmem:[%s3754_s15 + $0x20] sm:$0xff] %v2751_v50  ;;  %v2755_v56 = vcvt.f32.s32 %v2754_v51  ;;  %v1689_v57 = vadd.f32 %v1688_v55, %v1495_v43  ;;  %v1690_v58 = vpop.f32.mrb[9].mxu0 }
 0x223   : > { %2155 = vst [vmem:[%s3754_s15 + $0x28] sm:$0xff] %v2753_v53  ;;  %v2757_v59 = vcvt.f32.s32 %v2756_v54  ;;  %v1691_v60 = vadd.f32 %v1690_v58, %v1497_v46  ;;  %v1692_v61 = vpop.f32.mrb[10].mxu0 }
 0x224   : > { %2156 = vst [vmem:[%s3754_s15 + $0x30] sm:$0xff] %v2755_v56  ;;  %v2030_v62 = vadd.f32 0.5, %v1689_v57  ;;  %v1693_v63 = vadd.f32 %v1692_v61, %v1499_v49  ;;  %v1694_v0 = vpop.f32.mrb[11].mxu0 }
 0x225   : > { %2157 = vst [vmem:[%s3754_s15 + $0x38] sm:$0xff] %v2757_v59  ;;  %v2031_v1 = vadd.f32 0.5, %v1691_v60  ;;  %v1695_v3 = vadd.f32 %v1694_v0, %v1501_v52  ;;  %v1505_v4 = vpop.f32.mrb[12].mxu1 }
 0x226   : > { %v2758_v5 = vtrunc.f32 %v2030_v62  ;;  %v2032_v6 = vadd.f32 0.5, %v1693_v63  ;;  %v1507_v8 = vpop.f32.mrb[13].mxu1 }
 0x227   : > { %v2760_v9 = vtrunc.f32 %v2031_v1  ;;  %v2033_v11 = vadd.f32 0.5, %v1695_v3  ;;  %v1509_v12 = vpop.f32.mrb[14].mxu1 }
 0x228   : > { %v2759_v13 = vcvt.f32.s32 %v2758_v5  ;;  %v2762_v14 = vtrunc.f32 %v2032_v6  ;;  %v1511_v2 = vpop.f32.mrb[15].mxu1 }
 0x229   : > { %v2761_v7 = vcvt.f32.s32 %v2760_v9  ;;  %v2764_v15 = vtrunc.f32 %v2033_v11  ;;  %v1698_v16 = vpop.f32.mrb[12].mxu0 }
 0x22a   : > { %2158 = vst [vmem:[%s3754_s15 + $0x40] sm:$0xff] %v2759_v13  ;;  %v2763_v10 = vcvt.f32.s32 %v2762_v14  ;;  %v1699_v17 = vadd.f32 %v1698_v16, %v1505_v4  ;;  %v1700_v18 = vpop.f32.mrb[13].mxu0 }
 0x22b   : > { %2159 = vst [vmem:[%s3754_s15 + $0x48] sm:$0xff] %v2761_v7  ;;  %v2765_v19 = vcvt.f32.s32 %v2764_v15  ;;  %v1701_v20 = vadd.f32 %v1700_v18, %v1507_v8  ;;  %v1702_v21 = vpop.f32.mrb[14].mxu0 }
 0x22c   : > { %2160 = vst [vmem:[%s3754_s15 + $0x50] sm:$0xff] %v2763_v10  ;;  %v2034_v22 = vadd.f32 0.5, %v1699_v17  ;;  %v1703_v23 = vadd.f32 %v1702_v21, %v1509_v12  ;;  %v1704_v24 = vpop.f32.mrb[15].mxu0 }
 0x22d   : > { %2161 = vst [vmem:[%s3754_s15 + $0x58] sm:$0xff] %v2765_v19  ;;  %v2035_v25 = vadd.f32 0.5, %v1701_v20  ;;  %v1705_v26 = vadd.f32 %v1704_v24, %v1511_v2  ;;  %v1515_v27 = vpop.f32.mrb[16].mxu1 }
 0x22e   : > { %v2766_v28 = vtrunc.f32 %v2034_v22  ;;  %v2036_v29 = vadd.f32 0.5, %v1703_v23  ;;  %v1517_v30 = vpop.f32.mrb[17].mxu1 }
 0x22f   : > { %v2768_v31 = vtrunc.f32 %v2035_v25  ;;  %v2037_v32 = vadd.f32 0.5, %v1705_v26  ;;  %v1519_v33 = vpop.f32.mrb[18].mxu1 }
 0x230   : > { %v2767_v34 = vcvt.f32.s32 %v2766_v28  ;;  %v2770_v35 = vtrunc.f32 %v2036_v29  ;;  %v1521_v36 = vpop.f32.mrb[19].mxu1 }
 0x231   : > { %v2769_v37 = vcvt.f32.s32 %v2768_v31  ;;  %v2772_v38 = vtrunc.f32 %v2037_v32  ;;  %v1708_v39 = vpop.f32.mrb[16].mxu0 }
 0x232   : > { %2162 = vst [vmem:[%s3754_s15 + $0x60] sm:$0xff] %v2767_v34  ;;  %v2771_v40 = vcvt.f32.s32 %v2770_v35  ;;  %v1709_v41 = vadd.f32 %v1708_v39, %v1515_v27  ;;  %v1710_v42 = vpop.f32.mrb[17].mxu0 }
 0x233   : > { %2163 = vst [vmem:[%s3754_s15 + $0x68] sm:$0xff] %v2769_v37  ;;  %v2773_v43 = vcvt.f32.s32 %v2772_v38  ;;  %v1711_v44 = vadd.f32 %v1710_v42, %v1517_v30  ;;  %v1712_v45 = vpop.f32.mrb[18].mxu0 }
 0x234   : > { %2164 = vst [vmem:[%s3754_s15 + $0x70] sm:$0xff] %v2771_v40  ;;  %v2038_v46 = vadd.f32 0.5, %v1709_v41  ;;  %v1713_v47 = vadd.f32 %v1712_v45, %v1519_v33  ;;  %v1714_v48 = vpop.f32.mrb[19].mxu0 }
 0x235   : > { %2165 = vst [vmem:[%s3754_s15 + $0x78] sm:$0xff] %v2773_v43  ;;  %v2039_v49 = vadd.f32 0.5, %v1711_v44  ;;  %v1715_v50 = vadd.f32 %v1714_v48, %v1521_v36  ;;  %v1525_v51 = vpop.f32.mrb[20].mxu1 }
 0x236   : > { %v2774_v52 = vtrunc.f32 %v2038_v46  ;;  %v2040_v53 = vadd.f32 0.5, %v1713_v47  ;;  %v1527_v54 = vpop.f32.mrb[21].mxu1 }
 0x237   : > { %v2776_v55 = vtrunc.f32 %v2039_v49  ;;  %v2041_v56 = vadd.f32 0.5, %v1715_v50  ;;  %v1529_v57 = vpop.f32.mrb[22].mxu1 }
 0x238   : > { %v2775_v58 = vcvt.f32.s32 %v2774_v52  ;;  %v2778_v59 = vtrunc.f32 %v2040_v53  ;;  %v1531_v60 = vpop.f32.mrb[23].mxu1 }
 0x239   : > { %v2777_v61 = vcvt.f32.s32 %v2776_v55  ;;  %v2780_v62 = vtrunc.f32 %v2041_v56  ;;  %v1718_v63 = vpop.f32.mrb[20].mxu0 }
 0x23a   : > { %2166 = vst [vmem:[%s3754_s15 + $0x80] sm:$0xff] %v2775_v58  ;;  %v2779_v0 = vcvt.f32.s32 %v2778_v59  ;;  %v1719_v1 = vadd.f32 %v1718_v63, %v1525_v51  ;;  %v1720_v3 = vpop.f32.mrb[21].mxu0 }
 0x23b   : > { %2167 = vst [vmem:[%s3754_s15 + $0x88] sm:$0xff] %v2777_v61  ;;  %v2781_v4 = vcvt.f32.s32 %v2780_v62  ;;  %v1721_v5 = vadd.f32 %v1720_v3, %v1527_v54  ;;  %v1722_v6 = vpop.f32.mrb[22].mxu0 }
 0x23c   : > { %2168 = vst [vmem:[%s3754_s15 + $0x90] sm:$0xff] %v2779_v0  ;;  %v2042_v8 = vadd.f32 0.5, %v1719_v1  ;;  %v1723_v9 = vadd.f32 %v1722_v6, %v1529_v57  ;;  %v1724_v11 = vpop.f32.mrb[23].mxu0 }
 0x23d   : > { %2169 = vst [vmem:[%s3754_s15 + $0x98] sm:$0xff] %v2781_v4  ;;  %v2043_v12 = vadd.f32 0.5, %v1721_v5  ;;  %v1725_v13 = vadd.f32 %v1724_v11, %v1531_v60  ;;  %v1535_v14 = vpop.f32.mrb[24].mxu1 }
 0x23e   : > { %v2782_v2 = vtrunc.f32 %v2042_v8  ;;  %v2044_v7 = vadd.f32 0.5, %v1723_v9  ;;  %v1537_v15 = vpop.f32.mrb[25].mxu1 }
 0x23f   : > { %v2784_v16 = vtrunc.f32 %v2043_v12  ;;  %v2045_v10 = vadd.f32 0.5, %v1725_v13  ;;  %v1539_v17 = vpop.f32.mrb[26].mxu1 }
 0x240   : > { %v2783_v18 = vcvt.f32.s32 %v2782_v2  ;;  %v2786_v19 = vtrunc.f32 %v2044_v7  ;;  %v1541_v20 = vpop.f32.mrb[27].mxu1 }
 0x241   : > { %v2785_v21 = vcvt.f32.s32 %v2784_v16  ;;  %v2788_v22 = vtrunc.f32 %v2045_v10  ;;  %v1728_v23 = vpop.f32.mrb[24].mxu0 }
 0x242   : > { %2170 = vst [vmem:[%s3754_s15 + $0xa0] sm:$0xff] %v2783_v18  ;;  %v2787_v24 = vcvt.f32.s32 %v2786_v19  ;;  %v1729_v25 = vadd.f32 %v1728_v23, %v1535_v14  ;;  %v1730_v26 = vpop.f32.mrb[25].mxu0 }
 0x243   : > { %2171 = vst [vmem:[%s3754_s15 + $0xa8] sm:$0xff] %v2785_v21  ;;  %v2789_v27 = vcvt.f32.s32 %v2788_v22  ;;  %v1731_v28 = vadd.f32 %v1730_v26, %v1537_v15  ;;  %v1732_v29 = vpop.f32.mrb[26].mxu0 }
 0x244   : > { %2172 = vst [vmem:[%s3754_s15 + $0xb0] sm:$0xff] %v2787_v24  ;;  %v2046_v30 = vadd.f32 0.5, %v1729_v25  ;;  %v1733_v31 = vadd.f32 %v1732_v29, %v1539_v17  ;;  %v1734_v32 = vpop.f32.mrb[27].mxu0 }
 0x245   : > { %2173 = vst [vmem:[%s3754_s15 + $0xb8] sm:$0xff] %v2789_v27  ;;  %v2047_v33 = vadd.f32 0.5, %v1731_v28  ;;  %v1735_v34 = vadd.f32 %v1734_v32, %v1541_v20  ;;  %v1545_v35 = vpop.f32.mrb[28].mxu1 }
 0x246   : > { %v2790_v36 = vtrunc.f32 %v2046_v30  ;;  %v2048_v37 = vadd.f32 0.5, %v1733_v31  ;;  %v1547_v38 = vpop.f32.mrb[29].mxu1 }
 0x247   : > { %v2792_v39 = vtrunc.f32 %v2047_v33  ;;  %v2049_v40 = vadd.f32 0.5, %v1735_v34  ;;  %v1549_v41 = vpop.f32.mrb[30].mxu1 }
 0x248   : > { %v2791_v42 = vcvt.f32.s32 %v2790_v36  ;;  %v2794_v43 = vtrunc.f32 %v2048_v37  ;;  %v1551_v44 = vpop.f32.mrb[31].mxu1 }
 0x249   : > { %v2793_v45 = vcvt.f32.s32 %v2792_v39  ;;  %v2796_v46 = vtrunc.f32 %v2049_v40  ;;  %v1738_v47 = vpop.f32.mrb[28].mxu0 }
 0x24a   : > { %2174 = vst [vmem:[%s3754_s15 + $0xc0] sm:$0xff] %v2791_v42  ;;  %v2795_v48 = vcvt.f32.s32 %v2794_v43  ;;  %v1739_v49 = vadd.f32 %v1738_v47, %v1545_v35  ;;  %v1740_v50 = vpop.f32.mrb[29].mxu0 }
 0x24b   : > { %2175 = vst [vmem:[%s3754_s15 + $0xc8] sm:$0xff] %v2793_v45  ;;  %v2797_v51 = vcvt.f32.s32 %v2796_v46  ;;  %v1741_v52 = vadd.f32 %v1740_v50, %v1547_v38  ;;  %v1742_v53 = vpop.f32.mrb[30].mxu0 }
 0x24c   : > { %2176 = vst [vmem:[%s3754_s15 + $0xd0] sm:$0xff] %v2795_v48  ;;  %v2050_v54 = vadd.f32 0.5, %v1739_v49  ;;  %v1743_v55 = vadd.f32 %v1742_v53, %v1549_v41  ;;  %v1744_v56 = vpop.f32.mrb[31].mxu0 }
 0x24d   : > { %2177 = vst [vmem:[%s3754_s15 + $0xd8] sm:$0xff] %v2797_v51  ;;  %v2051_v57 = vadd.f32 0.5, %v1741_v52  ;;  %v1745_v58 = vadd.f32 %v1744_v56, %v1551_v44  ;;  %v1555_v59 = vpop.f32.mrb[32].mxu1 }
 0x24e   : > { %v2798_v60 = vtrunc.f32 %v2050_v54  ;;  %v2052_v61 = vadd.f32 0.5, %v1743_v55  ;;  %v1557_v62 = vpop.f32.mrb[33].mxu1 }
 0x24f   : > { %v2800_v63 = vtrunc.f32 %v2051_v57  ;;  %v2053_v0 = vadd.f32 0.5, %v1745_v58  ;;  %v1559_v1 = vpop.f32.mrb[34].mxu1 }
 0x250   : > { %v2799_v3 = vcvt.f32.s32 %v2798_v60  ;;  %v2802_v4 = vtrunc.f32 %v2052_v61  ;;  %v1561_v5 = vpop.f32.mrb[35].mxu1 }
 0x251   : > { %v2801_v6 = vcvt.f32.s32 %v2800_v63  ;;  %v2804_v8 = vtrunc.f32 %v2053_v0  ;;  %v1748_v9 = vpop.f32.mrb[32].mxu0 }
 0x252   : > { %2178 = vst [vmem:[%s3754_s15 + $0xe0] sm:$0xff] %v2799_v3  ;;  %v2803_v11 = vcvt.f32.s32 %v2802_v4  ;;  %v1749_v12 = vadd.f32 %v1748_v9, %v1555_v59  ;;  %v1750_v13 = vpop.f32.mrb[33].mxu0 }
 0x253   : > { %2179 = vst [vmem:[%s3754_s15 + $0xe8] sm:$0xff] %v2801_v6  ;;  %v2805_v14 = vcvt.f32.s32 %v2804_v8  ;;  %v1751_v2 = vadd.f32 %v1750_v13, %v1557_v62  ;;  %v1752_v7 = vpop.f32.mrb[34].mxu0 }
 0x254   : > { %2180 = vst [vmem:[%s3754_s15 + $0xf0] sm:$0xff] %v2803_v11  ;;  %v2054_v15 = vadd.f32 0.5, %v1749_v12  ;;  %v1753_v16 = vadd.f32 %v1752_v7, %v1559_v1  ;;  %v1754_v10 = vpop.f32.mrb[35].mxu0 }
 0x255   : > { %2181 = vst [vmem:[%s3754_s15 + $0xf8] sm:$0xff] %v2805_v14  ;;  %v2055_v17 = vadd.f32 0.5, %v1751_v2  ;;  %v1755_v18 = vadd.f32 %v1754_v10, %v1561_v5  ;;  %v1565_v19 = vpop.f32.mrb[36].mxu1 }
 0x256   : > { %v2806_v20 = vtrunc.f32 %v2054_v15  ;;  %v2056_v21 = vadd.f32 0.5, %v1753_v16  ;;  %v1567_v22 = vpop.f32.mrb[37].mxu1 }
 0x257   : > { %v2808_v23 = vtrunc.f32 %v2055_v17  ;;  %v2057_v24 = vadd.f32 0.5, %v1755_v18  ;;  %v1569_v25 = vpop.f32.mrb[38].mxu1 }
 0x258   : > { %v2807_v26 = vcvt.f32.s32 %v2806_v20  ;;  %v2810_v27 = vtrunc.f32 %v2056_v21  ;;  %v1571_v28 = vpop.f32.mrb[39].mxu1 }
 0x259   : > { %v2809_v29 = vcvt.f32.s32 %v2808_v23  ;;  %v2812_v30 = vtrunc.f32 %v2057_v24  ;;  %v1758_v31 = vpop.f32.mrb[36].mxu0 }
 0x25a   : > { %2182 = vst [vmem:[%s3754_s15 + $0x100] sm:$0xff] %v2807_v26  ;;  %v2811_v32 = vcvt.f32.s32 %v2810_v27  ;;  %v1759_v33 = vadd.f32 %v1758_v31, %v1565_v19  ;;  %v1760_v34 = vpop.f32.mrb[37].mxu0 }
 0x25b   : > { %2183 = vst [vmem:[%s3754_s15 + $0x108] sm:$0xff] %v2809_v29  ;;  %v2813_v35 = vcvt.f32.s32 %v2812_v30  ;;  %v1761_v36 = vadd.f32 %v1760_v34, %v1567_v22  ;;  %v1762_v37 = vpop.f32.mrb[38].mxu0 }
 0x25c   : > { %2184 = vst [vmem:[%s3754_s15 + $0x110] sm:$0xff] %v2811_v32  ;;  %v2058_v38 = vadd.f32 0.5, %v1759_v33  ;;  %v1763_v39 = vadd.f32 %v1762_v37, %v1569_v25  ;;  %v1764_v40 = vpop.f32.mrb[39].mxu0 }
 0x25d   : > { %2185 = vst [vmem:[%s3754_s15 + $0x118] sm:$0xff] %v2813_v35  ;;  %v2059_v41 = vadd.f32 0.5, %v1761_v36  ;;  %v1765_v42 = vadd.f32 %v1764_v40, %v1571_v28  ;;  %v1575_v43 = vpop.f32.mrb[40].mxu1 }
 0x25e   : > { %v2814_v44 = vtrunc.f32 %v2058_v38  ;;  %v2060_v45 = vadd.f32 0.5, %v1763_v39  ;;  %v1577_v46 = vpop.f32.mrb[41].mxu1 }
 0x25f   : > { %v2816_v47 = vtrunc.f32 %v2059_v41  ;;  %v2061_v48 = vadd.f32 0.5, %v1765_v42  ;;  %v1579_v49 = vpop.f32.mrb[42].mxu1 }
 0x260   : > { %v2815_v50 = vcvt.f32.s32 %v2814_v44  ;;  %v2818_v51 = vtrunc.f32 %v2060_v45  ;;  %v1581_v52 = vpop.f32.mrb[43].mxu1 }
 0x261   : > { %v2817_v53 = vcvt.f32.s32 %v2816_v47  ;;  %v2820_v54 = vtrunc.f32 %v2061_v48  ;;  %v1768_v55 = vpop.f32.mrb[40].mxu0 }
 0x262   : > { %2186 = vst [vmem:[%s3754_s15 + $0x120] sm:$0xff] %v2815_v50  ;;  %v2819_v56 = vcvt.f32.s32 %v2818_v51  ;;  %v1769_v57 = vadd.f32 %v1768_v55, %v1575_v43  ;;  %v1770_v58 = vpop.f32.mrb[41].mxu0 }
 0x263   : > { %2187 = vst [vmem:[%s3754_s15 + $0x128] sm:$0xff] %v2817_v53  ;;  %v2821_v59 = vcvt.f32.s32 %v2820_v54  ;;  %v1771_v60 = vadd.f32 %v1770_v58, %v1577_v46  ;;  %v1772_v61 = vpop.f32.mrb[42].mxu0 }
 0x264   : > { %2188 = vst [vmem:[%s3754_s15 + $0x130] sm:$0xff] %v2819_v56  ;;  %v2062_v62 = vadd.f32 0.5, %v1769_v57  ;;  %v1773_v63 = vadd.f32 %v1772_v61, %v1579_v49  ;;  %v1774_v0 = vpop.f32.mrb[43].mxu0 }
 0x265   : > { %2189 = vst [vmem:[%s3754_s15 + $0x138] sm:$0xff] %v2821_v59  ;;  %v2063_v1 = vadd.f32 0.5, %v1771_v60  ;;  %v1775_v3 = vadd.f32 %v1774_v0, %v1581_v52  ;;  %v1585_v4 = vpop.f32.mrb[44].mxu1 }
 0x266   : > { %v2822_v5 = vtrunc.f32 %v2062_v62  ;;  %v2064_v6 = vadd.f32 0.5, %v1773_v63  ;;  %v1587_v8 = vpop.f32.mrb[45].mxu1 }
 0x267   : > { %v2824_v9 = vtrunc.f32 %v2063_v1  ;;  %v2065_v11 = vadd.f32 0.5, %v1775_v3  ;;  %v1589_v12 = vpop.f32.mrb[46].mxu1 }
 0x268   : > { %v2823_v13 = vcvt.f32.s32 %v2822_v5  ;;  %v2826_v14 = vtrunc.f32 %v2064_v6  ;;  %v1591_v2 = vpop.f32.mrb[47].mxu1 }
 0x269   : > { %v2825_v7 = vcvt.f32.s32 %v2824_v9  ;;  %v2828_v15 = vtrunc.f32 %v2065_v11  ;;  %v1778_v16 = vpop.f32.mrb[44].mxu0 }
 0x26a   : > { %2190 = vst [vmem:[%s3754_s15 + $0x140] sm:$0xff] %v2823_v13  ;;  %v2827_v10 = vcvt.f32.s32 %v2826_v14  ;;  %v1779_v17 = vadd.f32 %v1778_v16, %v1585_v4  ;;  %v1780_v18 = vpop.f32.mrb[45].mxu0 }
 0x26b   : > { %2191 = vst [vmem:[%s3754_s15 + $0x148] sm:$0xff] %v2825_v7  ;;  %v2829_v19 = vcvt.f32.s32 %v2828_v15  ;;  %v1781_v20 = vadd.f32 %v1780_v18, %v1587_v8  ;;  %v1782_v21 = vpop.f32.mrb[46].mxu0 }
 0x26c   : > { %2192 = vst [vmem:[%s3754_s15 + $0x150] sm:$0xff] %v2827_v10  ;;  %v2066_v22 = vadd.f32 0.5, %v1779_v17  ;;  %v1783_v23 = vadd.f32 %v1782_v21, %v1589_v12  ;;  %v1784_v24 = vpop.f32.mrb[47].mxu0 }
 0x26d   : > { %2193 = vst [vmem:[%s3754_s15 + $0x158] sm:$0xff] %v2829_v19  ;;  %v2067_v25 = vadd.f32 0.5, %v1781_v20  ;;  %v1785_v26 = vadd.f32 %v1784_v24, %v1591_v2  ;;  %v1595_v27 = vpop.f32.mrb[48].mxu1 }
 0x26e   : > { %v2830_v28 = vtrunc.f32 %v2066_v22  ;;  %v2068_v29 = vadd.f32 0.5, %v1783_v23  ;;  %v1597_v30 = vpop.f32.mrb[49].mxu1 }
 0x26f   : > { %v2832_v31 = vtrunc.f32 %v2067_v25  ;;  %v2069_v32 = vadd.f32 0.5, %v1785_v26  ;;  %v1599_v33 = vpop.f32.mrb[50].mxu1 }
 0x270   : > { %v2831_v34 = vcvt.f32.s32 %v2830_v28  ;;  %v2834_v35 = vtrunc.f32 %v2068_v29  ;;  %v1601_v36 = vpop.f32.mrb[51].mxu1 }
 0x271   : > { %v2833_v37 = vcvt.f32.s32 %v2832_v31  ;;  %v2836_v38 = vtrunc.f32 %v2069_v32  ;;  %v1788_v39 = vpop.f32.mrb[48].mxu0 }
 0x272   : > { %2194 = vst [vmem:[%s3754_s15 + $0x160] sm:$0xff] %v2831_v34  ;;  %v2835_v40 = vcvt.f32.s32 %v2834_v35  ;;  %v1789_v41 = vadd.f32 %v1788_v39, %v1595_v27  ;;  %v1790_v42 = vpop.f32.mrb[49].mxu0 }
 0x273   : > { %2195 = vst [vmem:[%s3754_s15 + $0x168] sm:$0xff] %v2833_v37  ;;  %v2837_v43 = vcvt.f32.s32 %v2836_v38  ;;  %v1791_v44 = vadd.f32 %v1790_v42, %v1597_v30  ;;  %v1792_v45 = vpop.f32.mrb[50].mxu0 }
 0x274   : > { %2196 = vst [vmem:[%s3754_s15 + $0x170] sm:$0xff] %v2835_v40  ;;  %v2070_v46 = vadd.f32 0.5, %v1789_v41  ;;  %v1793_v47 = vadd.f32 %v1792_v45, %v1599_v33  ;;  %v1794_v48 = vpop.f32.mrb[51].mxu0 }
 0x275   : > { %2197 = vst [vmem:[%s3754_s15 + $0x178] sm:$0xff] %v2837_v43  ;;  %v2071_v49 = vadd.f32 0.5, %v1791_v44  ;;  %v1795_v50 = vadd.f32 %v1794_v48, %v1601_v36  ;;  %v1605_v51 = vpop.f32.mrb[52].mxu1 }
 0x276   : > { %v2838_v52 = vtrunc.f32 %v2070_v46  ;;  %v2072_v53 = vadd.f32 0.5, %v1793_v47  ;;  %v1607_v54 = vpop.f32.mrb[53].mxu1 }
 0x277   : > { %v2840_v55 = vtrunc.f32 %v2071_v49  ;;  %v2073_v56 = vadd.f32 0.5, %v1795_v50  ;;  %v1609_v57 = vpop.f32.mrb[54].mxu1 }
 0x278   : > { %v2839_v58 = vcvt.f32.s32 %v2838_v52  ;;  %v2842_v59 = vtrunc.f32 %v2072_v53  ;;  %v1611_v60 = vpop.f32.mrb[55].mxu1 }
 0x279   : > { %v2841_v61 = vcvt.f32.s32 %v2840_v55  ;;  %v2844_v62 = vtrunc.f32 %v2073_v56  ;;  %v1798_v63 = vpop.f32.mrb[52].mxu0 }
 0x27a   : > { %2198 = vst [vmem:[%s3754_s15 + $0x180] sm:$0xff] %v2839_v58  ;;  %v2843_v0 = vcvt.f32.s32 %v2842_v59  ;;  %v1799_v1 = vadd.f32 %v1798_v63, %v1605_v51  ;;  %v1800_v3 = vpop.f32.mrb[53].mxu0 }
 0x27b   : > { %2199 = vst [vmem:[%s3754_s15 + $0x188] sm:$0xff] %v2841_v61  ;;  %v2845_v4 = vcvt.f32.s32 %v2844_v62  ;;  %v1801_v5 = vadd.f32 %v1800_v3, %v1607_v54  ;;  %v1802_v6 = vpop.f32.mrb[54].mxu0 }
 0x27c   : > { %2200 = vst [vmem:[%s3754_s15 + $0x190] sm:$0xff] %v2843_v0  ;;  %v2074_v8 = vadd.f32 0.5, %v1799_v1  ;;  %v1803_v9 = vadd.f32 %v1802_v6, %v1609_v57  ;;  %v1804_v11 = vpop.f32.mrb[55].mxu0 }
 0x27d   : > { %2201 = vst [vmem:[%s3754_s15 + $0x198] sm:$0xff] %v2845_v4  ;;  %v2075_v12 = vadd.f32 0.5, %v1801_v5  ;;  %v1805_v13 = vadd.f32 %v1804_v11, %v1611_v60  ;;  %v1615_v14 = vpop.f32.mrb[56].mxu1 }
 0x27e   : > { %v2846_v2 = vtrunc.f32 %v2074_v8  ;;  %v2076_v7 = vadd.f32 0.5, %v1803_v9  ;;  %v1617_v15 = vpop.f32.mrb[57].mxu1 }
 0x27f   : > { %v2848_v16 = vtrunc.f32 %v2075_v12  ;;  %v2077_v10 = vadd.f32 0.5, %v1805_v13  ;;  %v1619_v17 = vpop.f32.mrb[58].mxu1 }
 0x280   : > { %v2847_v18 = vcvt.f32.s32 %v2846_v2  ;;  %v2850_v19 = vtrunc.f32 %v2076_v7  ;;  %v1621_v20 = vpop.f32.mrb[59].mxu1 }
 0x281   : > { %v2849_v21 = vcvt.f32.s32 %v2848_v16  ;;  %v2852_v22 = vtrunc.f32 %v2077_v10  ;;  %v1808_v23 = vpop.f32.mrb[56].mxu0 }
 0x282   : > { %2202 = vst [vmem:[%s3754_s15 + $0x1a0] sm:$0xff] %v2847_v18  ;;  %v2851_v24 = vcvt.f32.s32 %v2850_v19  ;;  %v1809_v25 = vadd.f32 %v1808_v23, %v1615_v14  ;;  %v1810_v26 = vpop.f32.mrb[57].mxu0 }
 0x283   : > { %2203 = vst [vmem:[%s3754_s15 + $0x1a8] sm:$0xff] %v2849_v21  ;;  %v2853_v27 = vcvt.f32.s32 %v2852_v22  ;;  %v1811_v28 = vadd.f32 %v1810_v26, %v1617_v15  ;;  %v1812_v29 = vpop.f32.mrb[58].mxu0 }
 0x284   : > { %2204 = vst [vmem:[%s3754_s15 + $0x1b0] sm:$0xff] %v2851_v24  ;;  %v2078_v30 = vadd.f32 0.5, %v1809_v25  ;;  %v1813_v31 = vadd.f32 %v1812_v29, %v1619_v17  ;;  %v1814_v32 = vpop.f32.mrb[59].mxu0 }
 0x285   : > { %2205 = vst [vmem:[%s3754_s15 + $0x1b8] sm:$0xff] %v2853_v27  ;;  %v2079_v33 = vadd.f32 0.5, %v1811_v28  ;;  %v1815_v34 = vadd.f32 %v1814_v32, %v1621_v20  ;;  %v1625_v35 = vpop.f32.mrb[60].mxu1 }
 0x286   : > { %v2854_v36 = vtrunc.f32 %v2078_v30  ;;  %v2080_v37 = vadd.f32 0.5, %v1813_v31  ;;  %v1627_v38 = vpop.f32.mrb[61].mxu1 }
 0x287   : > { %v2856_v39 = vtrunc.f32 %v2079_v33  ;;  %v2081_v40 = vadd.f32 0.5, %v1815_v34  ;;  %v1629_v41 = vpop.f32.mrb[62].mxu1 }
 0x288   : > { %v2855_v42 = vcvt.f32.s32 %v2854_v36  ;;  %v2858_v43 = vtrunc.f32 %v2080_v37  ;;  %v1631_v44 = vpop.f32.mrb[63].mxu1 }
 0x289   : > { %v2857_v45 = vcvt.f32.s32 %v2856_v39  ;;  %v2860_v46 = vtrunc.f32 %v2081_v40  ;;  %v1818_v47 = vpop.f32.mrb[60].mxu0 }
 0x28a   : > { %2206 = vst [vmem:[%s3754_s15 + $0x1c0] sm:$0xff] %v2855_v42  ;;  %v2859_v48 = vcvt.f32.s32 %v2858_v43  ;;  %v1819_v49 = vadd.f32 %v1818_v47, %v1625_v35  ;;  %v1820_v50 = vpop.f32.mrb[61].mxu0 }
 0x28b   : > { %2207 = vst [vmem:[%s3754_s15 + $0x1c8] sm:$0xff] %v2857_v45  ;;  %v2861_v51 = vcvt.f32.s32 %v2860_v46  ;;  %v1821_v52 = vadd.f32 %v1820_v50, %v1627_v38  ;;  %v1822_v53 = vpop.f32.mrb[62].mxu0 }
 0x28c   : > { %2208 = vst [vmem:[%s3754_s15 + $0x1d0] sm:$0xff] %v2859_v48  ;;  %v2082_v54 = vadd.f32 0.5, %v1819_v49  ;;  %v1823_v55 = vadd.f32 %v1822_v53, %v1629_v41  ;;  %v1824_v56 = vpop.f32.mrb[63].mxu0 }
 0x28d   : > { %2209 = vst [vmem:[%s3754_s15 + $0x1d8] sm:$0xff] %v2861_v51  ;;  %v2083_v57 = vadd.f32 0.5, %v1821_v52  ;;  %v1825_v58 = vadd.f32 %v1824_v56, %v1631_v44 }
 0x28e   : > { %v2862_v59 = vtrunc.f32 %v2082_v54  ;;  %v2084_v60 = vadd.f32 0.5, %v1823_v55 }
 0x28f   : > { %v2864_v61 = vtrunc.f32 %v2083_v57  ;;  %v2085_v62 = vadd.f32 0.5, %v1825_v58 }
 0x290   : > { %v2863_v63 = vcvt.f32.s32 %v2862_v59  ;;  %v2866_v0 = vtrunc.f32 %v2084_v60 }
 0x291   : > { %v2865_v1 = vcvt.f32.s32 %v2864_v61  ;;  %v2868_v3 = vtrunc.f32 %v2085_v62 }
 0x292   : > { %2210 = vst [vmem:[%s3754_s15 + $0x1e0] sm:$0xff] %v2863_v63  ;;  %v2867_v4 = vcvt.f32.s32 %v2866_v0 }
 0x293   : > { %2211 = vst [vmem:[%s3754_s15 + $0x1e8] sm:$0xff] %v2865_v1  ;;  %v2869_v5 = vcvt.f32.s32 %v2868_v3 }
 0x294   : > { %2212 = vst [vmem:[%s3754_s15 + $0x1f0] sm:$0xff] %v2867_v4 }
 0x295   : > { %2213 = vst [vmem:[%s3754_s15 + $0x1f8] sm:$0xff] %v2869_v5 }
 0x296   : > { %3079 = shalt.err (!%p3076_p5)
}
 0x297   : > { %s3080_s4 = scalar_lea.hbm %s3822_s27, 8192  ;;  %s3084_s16 = scalar_lea.hbm %s3878_s2, 16384 }
 0x298   : > { %p3081_p4 = scmp.ne.s32.totalorder %s3822_s27, %s3080_s4  ;;  %p3085_p12 = scmp.lt.u32.totalorder %s3822_s27, %s3878_s2 }
 0x299   : > { %p3086_p1 = scmp.lt.u32.totalorder %s3084_s16, %s3080_s4  ;;  %p3088_p8 = scmp.lt.u32.totalorder %s3080_s4, %s3822_s27 }
 0x29a   : > { %p3082_p7 = pnand %p3081_p4, %p3886_p9 }
 0x29b   : > { %p3087_p3 = por %p3086_p1, %p3085_p12 }
 0x29c   : > { %p3083_p10 = pneg %p3082_p7 }
 0x29d   : > { %p3089_p11 = por %p3088_p8, %p3087_p3 }
 0x29f   : > { %p3090_p0 = pnand %p3089_p11, %p3083_p10 }
 0x2a1   : > { %3093 = shalt.err (!%p3090_p0)
}
 0x2a2   : > { %s3156_s21 = smov 256   ;;  %s3157_s15 = smov 16  }
 0x2a3   : > { %2872 = dma.vmem_to_hbm [thread:$0]  (%p3886_p9), %s3824_s20, 8192, %s3822_s27, %s2215_s12, %s3156_s21, %s3156_s21, %s3157_s15  }
 0x2a4 PF: > { %s2246_s7 = sand.u32 1, %s3128_s9   ;;  %p3887_p6 = scmp.ne.s32.totalorder %s3883_s24, 0 }
 0x2a5   : > { %p3888_p13 = scmp.ge.s32.totalorder %s3148_s14, 2  ;;  %s2247_s25 = scalar_lea.sflag [#allocation5], %s2246_s7 }
 0x2a7   : > { %p2879_p2 = pnand %p3888_p13, %p3887_p6 }
 0x2a9   : > { %3123 = dma.done.wait (!%p2879_p2), %s2247_s25, 8192  }
 0x2aa   : > { %3125 = vsyncadd (!%p2879_p2), %s2247_s25, 4294959104  ;;  %s18_s14 = sadd.s32 1, %s3148_s14   ;;  %s3889_s9 = smov %s3132_s10 }
 0x2ab   : > { %p15_p5 = scmp.ge.s32.totalorder %s18_s14, 4   ;;  %s3890_s10 = smov %s3136_s11 }
 0x2ac   : > { %s3891_s11 = smov %s3229_s23  ;;  %s3892_s12 = smov %s3144_s13 }
 0x2ad   : > { %s3893_s13 = smov %s3895_s17  ;;  %17 = sbr.rel (!%p15_p5) target bundleno = 6 (0x6), region = 84 }
 0x2b4   :  { %2252 = vsyncpa [#allocation4], 1 }
 0x2b5   :  { %2254 = vsyncpa [#allocation4 + $0x1], 1 }
 0x2b6   :  { %2255 = vsyncpa [#allocation5], 1 }
 0x2b7   :  { %2257 = vsyncpa [#allocation5 + $0x1], 1 }

</bundles_post_ra>
